<compile_context>
chip_gen: v7x
topology: tpu7x:2x2x1
jax: 0.10.0
libtpu: 0.0.40
codegen_flags: <defaults>
</compile_context>

<pallas_src>
import jax
import jax.numpy as jnp
from jax import lax
from jax.experimental import pallas as pl
from jax.experimental.pallas import tpu as pltpu


def _round_up(n, m):
    return (n + m - 1) // m * m


def rnn_kernel(x_ref, h0_ref,
               wih0_ref, b0_ref,
               wblk_ref, b1_ref,
               wfc_ref, bfc_ref,
               out_ref, hout_ref,
               pre_scr, hseq_scr):
    """2-layer Elman RNN (tanh) + fc, wavefront-interleaved, one invocation.

    Shapes (already padded by the wrapper):
      x_ref   : (T, Bp, Ip)     time-major input, lane-dense features
      h0_ref  : (2, Bp, Hp)     initial hidden per layer
      wih0_ref: (Ip, Hp)        layer-0 input weights
      b0_ref  : (1, Hp)         layer-0 combined bias (b_ih + b_hh)
      wblk_ref: (2Hp, 2Hp)      fused [[Whh0, Wih1], [0, Whh1]]
      b1_ref  : (1, Hp)         layer-1 combined bias
      wfc_ref : (Hp, Cp), bfc_ref: (1, Cp)
      out_ref : (Bp, T, Cp)     fc(layer-1 hidden), already B-major (PyTorch order)
      hout_ref: (2, Bp, Hp)     final hidden per layer
      pre_scr : VMEM (T, Bp, 2Hp)  [x_t@Wih0 + b0 | b1] per step
      hseq_scr: VMEM (T, Bp, Hp)   layer-1 hidden states
    """
    T, Bp, Ip = x_ref.shape
    Hp = hseq_scr.shape[-1]

    # ---- hoisted layer-0 input projection (+b0) and layer-1 bias slab ----------
    x_flat = x_ref[...].reshape(T * Bp, Ip)
    proj0 = (jnp.dot(x_flat, wih0_ref[...], preferred_element_type=jnp.float32)
             + b0_ref[...]).reshape(T, Bp, Hp)
    pre_scr[:, :, 0:Hp] = proj0
    pre_scr[:, :, Hp:2 * Hp] = jnp.broadcast_to(b1_ref[...], (T, Bp, Hp))

    # ---- peeled wavefront step 0: only layer 0 at t = 0 ------------------------
    h0_first = jnp.tanh(
        jnp.dot(h0_ref[0], wblk_ref[0:Hp, 0:Hp],
                preferred_element_type=jnp.float32)
        + pre_scr[0, :, 0:Hp])
    hcat0 = jnp.concatenate([h0_first, h0_ref[1]], axis=-1)   # [h0_0 | h1_init]

    # ---- wavefront loop: step s computes layer-0 @ t=s and layer-1 @ t=s-1 -----
    # carry = [h0_{s-1} | h1_{s-2}]  ->  [h0_s | h1_{s-1}]
    def wavestep(s, hcat):
        h_new = jnp.tanh(
            jnp.dot(hcat, wblk_ref[...], preferred_element_type=jnp.float32)
            + pre_scr[s])
        hseq_scr[s - 1] = h_new[:, Hp:2 * Hp]      # layer-1 hidden at time s-1
        return h_new

    hcat = lax.fori_loop(1, T, wavestep, hcat0, unroll=True)

    # ---- peeled last wavefront step: layer 1 at t = T-1 ------------------------
    h1_last = jnp.tanh(
        jnp.dot(hcat, wblk_ref[:, Hp:2 * Hp],
                preferred_element_type=jnp.float32)
        + b1_ref[...])
    hseq_scr[T - 1] = h1_last
    hout_ref[0] = hcat[:, 0:Hp]                    # final layer-0 hidden (t=T-1)
    hout_ref[1] = h1_last                          # final layer-1 hidden (t=T-1)

    # ---- hoisted fc: one lane-dense matmul, stored in B-major (PyTorch) order --
    h_all = hseq_scr[...].reshape(T * Bp, Hp)
    o = (jnp.dot(h_all, wfc_ref[...], preferred_element_type=jnp.float32)
         + bfc_ref[...]).reshape(T, Bp, -1)
    for t in range(T):                              # static unroll; B-major placement
        out_ref[:, t, :] = o[t]


def rnn_model_forward(x, h0, params):
    """x: (B, T, I) f32, h0: (2, B, H) f32.  Returns (out (B*T, C), h (2, B, H))."""
    (wih0, whh0, b0), (wih1, whh1, b1), (wfc, bfc) = params
    B, T, I = x.shape
    H = h0.shape[-1]
    C = wfc.shape[-1]

    # TPU-friendly padding: batch -> 8 sublanes; features/hidden/classes -> 128 lanes.
    Bp = _round_up(B, 8)
    Hp = _round_up(H, 128)
    Cp = _round_up(C, 128)
    Ip = _round_up(I, 128)
    dB, dH, dC, dI = Bp - B, Hp - H, Cp - C, Ip - I

    x_tbi = jnp.pad(jnp.transpose(x, (1, 0, 2)), ((0, 0), (0, dB), (0, dI)))
    h0_p = jnp.pad(h0, ((0, 0), (0, dB), (0, dH)))

    wih0_p = jnp.pad(wih0, ((0, dI), (0, dH)))
    whh0_p = jnp.pad(whh0, ((0, dH), (0, dH)))
    b0_p = jnp.pad(b0, ((0, 0), (0, dH)))
    wih1_p = jnp.pad(wih1, ((0, dH), (0, dH)))
    whh1_p = jnp.pad(whh1, ((0, dH), (0, dH)))
    b1_p = jnp.pad(b1, ((0, 0), (0, dH)))
    wfc_p = jnp.pad(wfc, ((0, dH), (0, dC)))
    bfc_p = jnp.pad(bfc, ((0, 0), (0, dC)))

    # Fused wavefront recurrent weight: [[Whh0, Wih1], [0, Whh1]].  Zero padding of
    # each sub-block (and the structural zero block) keeps padded hidden lanes at
    # exactly zero through the recurrence.
    w_blk = jnp.zeros((2 * Hp, 2 * Hp), jnp.float32)
    w_blk = w_blk.at[:Hp, :Hp].set(whh0_p)
    w_blk = w_blk.at[:Hp, Hp:].set(wih1_p)
    w_blk = w_blk.at[Hp:, Hp:].set(whh1_p)

    vmem = pl.BlockSpec(memory_space=pltpu.MemorySpace.VMEM)
    out_btc, h_out = pl.pallas_call(
        rnn_kernel,
        out_shape=(jax.ShapeDtypeStruct((Bp, T, Cp), jnp.float32),
                   jax.ShapeDtypeStruct((2, Bp, Hp), jnp.float32)),
        in_specs=[vmem] * 8,
        out_specs=(vmem, vmem),
        scratch_shapes=[pltpu.VMEM((T, Bp, 2 * Hp), jnp.float32),
                        pltpu.VMEM((T, Bp, Hp), jnp.float32)],
    )(x_tbi, h0_p, wih0_p, b0_p, w_blk, b1_p, wfc_p, bfc_p)

    # Kernel already emitted PyTorch (B, T, C) row order: only slice off padding.
    out = out_btc[:B, :, :C].reshape(B * T, C)
    h = h_out[:, :B, :H]
    return out, h


def init_params(key, input_size, hidden_size, num_classes):
    """Deterministic params; PyTorch-style U(-1/sqrt(H), 1/sqrt(H)) init."""
    k = 1.0 / jnp.sqrt(hidden_size)
    keys = jax.random.split(key, 10)

    def u(kk, shape):
        return jax.random.uniform(kk, shape, jnp.float32, -k, k)

    # PyTorch orientation: weight_ih (H, in), weight_hh (H, H), fc weight (C, H).
    w_ih_l0 = u(keys[0], (hidden_size, input_size))
    w_hh_l0 = u(keys[1], (hidden_size, hidden_size))
    b_ih_l0 = u(keys[2], (hidden_size,))
    b_hh_l0 = u(keys[3], (hidden_size,))
    w_ih_l1 = u(keys[4], (hidden_size, hidden_size))
    w_hh_l1 = u(keys[5], (hidden_size, hidden_size))
    b_ih_l1 = u(keys[6], (hidden_size,))
    b_hh_l1 = u(keys[7], (hidden_size,))
    w_fc = u(keys[8], (num_classes, hidden_size))
    b_fc = u(keys[9], (num_classes,))

    # Kernel orientation: (in, out) matrices, (1, out) combined biases.
    layer0 = (w_ih_l0.T, w_hh_l0.T, (b_ih_l0 + b_hh_l0)[None, :])
    layer1 = (w_ih_l1.T, w_hh_l1.T, (b_ih_l1 + b_hh_l1)[None, :])
    fc = (w_fc.T, b_fc[None, :])
    return layer0, layer1, fc


def reference_forward(x, h0, params):
    """Pure-JAX reference matching torch.nn.RNN(batch_first=True) + Linear."""
    (wih0, whh0, b0), (wih1, whh1, b1), (wfc, bfc) = params
    B, T, _ = x.shape

    def run_layer(inp, h_init, wih, whh, b):
        def step(h, xt):
            h_new = jnp.tanh(xt @ wih + h @ whh + b)
            return h_new, h_new
        h_last, ys = jax.lax.scan(step, h_init, jnp.transpose(inp, (1, 0, 2)))
        return jnp.transpose(ys, (1, 0, 2)), h_last

    o0, h0f = run_layer(x, h0[0], wih0, whh0, b0)
    o1, h1f = run_layer(o0, h0[1], wih1, whh1, b1)
    out = o1.reshape(B * T, -1) @ wfc + bfc
    return out, jnp.stack([h0f, h1f], axis=0)


if __name__ == "__main__":
    # Small shapes consistent with the module: a character vocab (one-hot inputs),
    # hidden_size=64, num_layers=2, num_classes == input_size (char prediction).
    B, T = 2, 8
    input_size = 32          # stand-in vocab size (char_to_idx not loaded from disk)
    hidden_size = 64
    num_classes = input_size

    key = jax.random.PRNGKey(0)
    k_param, k_x = jax.random.split(key)
    params = init_params(k_param, input_size, hidden_size, num_classes)

    # One-hot character sequence, like the generation script feeds the RNN.
    char_ids = jax.random.randint(k_x, (B, T), 0, input_size)
    x = jax.nn.one_hot(char_ids, input_size, dtype=jnp.float32)   # (B, T, I)
    h0 = jnp.zeros((2, B, hidden_size), jnp.float32)              # init_hidden

    out, h = rnn_model_forward(x, h0, params)
    out = jax.block_until_ready(out)
    h = jax.block_until_ready(h)

    out_ref, h_ref = reference_forward(x, h0, params)
    assert out.shape == (B * T, num_classes)
    assert h.shape == (2, B, hidden_size)
    assert jnp.allclose(out, out_ref, atol=2e-5, rtol=2e-5)
    assert jnp.allclose(h, h_ref, atol=2e-5, rtol=2e-5)

    print("KERNEL_OK")
</pallas_src>

<mosaic_0001>
module attributes {stable_mosaic.version = 11 : i64} {
  func.func @rnn_kernel(%arg0: memref<8x8x128xf32, #tpu.memory_space<vmem>>, %arg1: memref<2x8x128xf32, #tpu.memory_space<vmem>>, %arg2: memref<128x128xf32, #tpu.memory_space<vmem>>, %arg3: memref<1x128xf32, #tpu.memory_space<vmem>>, %arg4: memref<256x256xf32, #tpu.memory_space<vmem>>, %arg5: memref<1x128xf32, #tpu.memory_space<vmem>>, %arg6: memref<128x128xf32, #tpu.memory_space<vmem>>, %arg7: memref<1x128xf32, #tpu.memory_space<vmem>>, %arg8: memref<8x8x128xf32, #tpu.memory_space<vmem>>, %arg9: memref<2x8x128xf32, #tpu.memory_space<vmem>>, %arg10: memref<8x8x256xf32, #tpu.memory_space<vmem>>, %arg11: memref<8x8x128xf32, #tpu.memory_space<vmem>>) attributes {dimension_semantics = [], scalar_prefetch = 0 : i64, scratch_operands = 2 : i64, tpu.core_type = #tpu.core_type<tc>} {
    %c0 = arith.constant 0 : index
    %c0_0 = arith.constant 0 : index
    %c0_1 = arith.constant 0 : index
    %0 = vector.load %arg0[%c0, %c0_0, %c0_1] : memref<8x8x128xf32, #tpu.memory_space<vmem>>, vector<8x8x128xf32>
    %1 = vector.shape_cast %0 : vector<8x8x128xf32> to vector<64x128xf32>
    %c0_2 = arith.constant 0 : index
    %c0_3 = arith.constant 0 : index
    %2 = vector.load %arg2[%c0_2, %c0_3] : memref<128x128xf32, #tpu.memory_space<vmem>>, vector<128x128xf32>
    %cst = arith.constant dense<0.000000e+00> : vector<64x128xf32>
    %3 = tpu.matmul %1, %2, %cst {dimension_numbers = #tpu.dot_dimension_numbers<[1], [0], [0], [1], [0, 0, 1, 1], [], []>} : vector<64x128xf32>, vector<128x128xf32>, vector<64x128xf32> -> vector<64x128xf32>
    %c0_4 = arith.constant 0 : index
    %c0_5 = arith.constant 0 : index
    %4 = vector.load %arg3[%c0_4, %c0_5] : memref<1x128xf32, #tpu.memory_space<vmem>>, vector<1x128xf32>
    %5 = vector.broadcast %4 : vector<1x128xf32> to vector<64x128xf32>
    %6 = arith.addf %3, %5 : vector<64x128xf32>
    %7 = vector.shape_cast %6 : vector<64x128xf32> to vector<8x8x128xf32>
    %c0_6 = arith.constant 0 : index
    %c0_7 = arith.constant 0 : index
    %c0_8 = arith.constant 0 : index
    %8 = vector.load %arg10[%c0_6, %c0_7, %c0_8] : memref<8x8x256xf32, #tpu.memory_space<vmem>>, vector<8x8x128xf32>
    tpu.vector_store %arg10[%c0_6, %c0_7, %c0_8], %7 {strides = array<i32>} : memref<8x8x256xf32, #tpu.memory_space<vmem>>, vector<8x8x128xf32>,
    %c0_9 = arith.constant 0 : index
    %c0_10 = arith.constant 0 : index
    %9 = vector.load %arg5[%c0_9, %c0_10] : memref<1x128xf32, #tpu.memory_space<vmem>>, vector<1x128xf32>
    %10 = vector.shape_cast %9 : vector<1x128xf32> to vector<1x1x128xf32>
    %11 = vector.broadcast %10 : vector<1x1x128xf32> to vector<8x8x128xf32>
    %c0_11 = arith.constant 0 : index
    %c0_12 = arith.constant 0 : index
    %c128 = arith.constant 128 : index
    %12 = vector.load %arg10[%c0_11, %c0_12, %c128] : memref<8x8x256xf32, #tpu.memory_space<vmem>>, vector<8x8x128xf32>
    tpu.vector_store %arg10[%c0_11, %c0_12, %c128], %11 {strides = array<i32>} : memref<8x8x256xf32, #tpu.memory_space<vmem>>, vector<8x8x128xf32>,
    %c0_13 = arith.constant 0 : index
    %c0_14 = arith.constant 0 : index
    %c0_15 = arith.constant 0 : index
    %13 = vector.load %arg1[%c0_13, %c0_14, %c0_15] : memref<2x8x128xf32, #tpu.memory_space<vmem>>, vector<1x8x128xf32>
    %14 = vector.shape_cast %13 : vector<1x8x128xf32> to vector<8x128xf32>
    %c0_16 = arith.constant 0 : index
    %c0_17 = arith.constant 0 : index
    %15 = vector.load %arg4[%c0_16, %c0_17] : memref<256x256xf32, #tpu.memory_space<vmem>>, vector<128x128xf32>
    %cst_18 = arith.constant dense<0.000000e+00> : vector<8x128xf32>
    %16 = tpu.matmul %14, %15, %cst_18 {dimension_numbers = #tpu.dot_dimension_numbers<[1], [0], [0], [1], [0, 0, 1, 1], [], []>} : vector<8x128xf32>, vector<128x128xf32>, vector<8x128xf32> -> vector<8x128xf32>
    %c0_19 = arith.constant 0 : index
    %c0_20 = arith.constant 0 : index
    %c0_21 = arith.constant 0 : index
    %17 = vector.load %arg10[%c0_19, %c0_20, %c0_21] : memref<8x8x256xf32, #tpu.memory_space<vmem>>, vector<1x8x128xf32>
    %18 = vector.shape_cast %17 : vector<1x8x128xf32> to vector<8x128xf32>
    %19 = arith.addf %16, %18 : vector<8x128xf32>
    %20 = math.tanh %19 : vector<8x128xf32>
    %c1 = arith.constant 1 : index
    %c0_22 = arith.constant 0 : index
    %c0_23 = arith.constant 0 : index
    %21 = vector.load %arg1[%c1, %c0_22, %c0_23] : memref<2x8x128xf32, #tpu.memory_space<vmem>>, vector<1x8x128xf32>
    %22 = vector.shape_cast %21 : vector<1x8x128xf32> to vector<8x128xf32>
    %23 = tpu.concatenate %20, %22 in 1 : vector<8x128xf32>, vector<8x128xf32> -> vector<8x256xf32>
    %c1_i32 = arith.constant 1 : i32
    %c0_24 = arith.constant 0 : index
    %c0_25 = arith.constant 0 : index
    %24 = vector.load %arg4[%c0_24, %c0_25] : memref<256x256xf32, #tpu.memory_space<vmem>>, vector<256x256xf32>
    %cst_26 = arith.constant dense<0.000000e+00> : vector<8x256xf32>
    %25 = tpu.matmul %23, %24, %cst_26 {dimension_numbers = #tpu.dot_dimension_numbers<[1], [0], [0], [1], [0, 0, 1, 1], [], []>} : vector<8x256xf32>, vector<256x256xf32>, vector<8x256xf32> -> vector<8x256xf32>
    %26 = arith.index_cast %c1_i32 : i32 to index
    %c0_27 = arith.constant 0 : index
    %c0_28 = arith.constant 0 : index
    %27 = vector.load %arg10[%26, %c0_27, %c0_28] : memref<8x8x256xf32, #tpu.memory_space<vmem>>, vector<1x8x256xf32>
    %28 = vector.shape_cast %27 : vector<1x8x256xf32> to vector<8x256xf32>
    %29 = arith.addf %25, %28 : vector<8x256xf32>
    %30 = math.tanh %29 : vector<8x256xf32>
    %31 = vector.extract_strided_slice %30 {offsets = [0, 128], sizes = [8, 128], strides = [1, 1]} : vector<8x256xf32> to vector<8x128xf32>
    %c1_i32_29 = arith.constant 1 : i32
    %32 = arith.subi %c1_i32, %c1_i32_29 : i32
    %33 = arith.index_cast %32 : i32 to index
    %c0_30 = arith.constant 0 : index
    %c0_31 = arith.constant 0 : index
    %34 = vector.load %arg11[%33, %c0_30, %c0_31] : memref<8x8x128xf32, #tpu.memory_space<vmem>>, vector<1x8x128xf32>
    %35 = vector.shape_cast %34 : vector<1x8x128xf32> to vector<8x128xf32>
    %36 = vector.shape_cast %31 : vector<8x128xf32> to vector<1x8x128xf32>
    tpu.vector_store %arg11[%33, %c0_30, %c0_31], %36 {strides = array<i32>} : memref<8x8x128xf32, #tpu.memory_space<vmem>>, vector<1x8x128xf32>,
    %c2_i32 = arith.constant 2 : i32
    %c0_32 = arith.constant 0 : index
    %c0_33 = arith.constant 0 : index
    %37 = vector.load %arg4[%c0_32, %c0_33] : memref<256x256xf32, #tpu.memory_space<vmem>>, vector<256x256xf32>
    %cst_34 = arith.constant dense<0.000000e+00> : vector<8x256xf32>
    %38 = tpu.matmul %30, %37, %cst_34 {dimension_numbers = #tpu.dot_dimension_numbers<[1], [0], [0], [1], [0, 0, 1, 1], [], []>} : vector<8x256xf32>, vector<256x256xf32>, vector<8x256xf32> -> vector<8x256xf32>
    %39 = arith.index_cast %c2_i32 : i32 to index
    %c0_35 = arith.constant 0 : index
    %c0_36 = arith.constant 0 : index
    %40 = vector.load %arg10[%39, %c0_35, %c0_36] : memref<8x8x256xf32, #tpu.memory_space<vmem>>, vector<1x8x256xf32>
    %41 = vector.shape_cast %40 : vector<1x8x256xf32> to vector<8x256xf32>
    %42 = arith.addf %38, %41 : vector<8x256xf32>
    %43 = math.tanh %42 : vector<8x256xf32>
    %44 = vector.extract_strided_slice %43 {offsets = [0, 128], sizes = [8, 128], strides = [1, 1]} : vector<8x256xf32> to vector<8x128xf32>
    %c1_i32_37 = arith.constant 1 : i32
    %45 = arith.subi %c2_i32, %c1_i32_37 : i32
    %46 = arith.index_cast %45 : i32 to index
    %c0_38 = arith.constant 0 : index
    %c0_39 = arith.constant 0 : index
    %47 = vector.load %arg11[%46, %c0_38, %c0_39] : memref<8x8x128xf32, #tpu.memory_space<vmem>>, vector<1x8x128xf32>
    %48 = vector.shape_cast %47 : vector<1x8x128xf32> to vector<8x128xf32>
    %49 = vector.shape_cast %44 : vector<8x128xf32> to vector<1x8x128xf32>
    tpu.vector_store %arg11[%46, %c0_38, %c0_39], %49 {strides = array<i32>} : memref<8x8x128xf32, #tpu.memory_space<vmem>>, vector<1x8x128xf32>,
    %c3_i32 = arith.constant 3 : i32
    %c0_40 = arith.constant 0 : index
    %c0_41 = arith.constant 0 : index
    %50 = vector.load %arg4[%c0_40, %c0_41] : memref<256x256xf32, #tpu.memory_space<vmem>>, vector<256x256xf32>
    %cst_42 = arith.constant dense<0.000000e+00> : vector<8x256xf32>
    %51 = tpu.matmul %43, %50, %cst_42 {dimension_numbers = #tpu.dot_dimension_numbers<[1], [0], [0], [1], [0, 0, 1, 1], [], []>} : vector<8x256xf32>, vector<256x256xf32>, vector<8x256xf32> -> vector<8x256xf32>
    %52 = arith.index_cast %c3_i32 : i32 to index
    %c0_43 = arith.constant 0 : index
    %c0_44 = arith.constant 0 : index
    %53 = vector.load %arg10[%52, %c0_43, %c0_44] : memref<8x8x256xf32, #tpu.memory_space<vmem>>, vector<1x8x256xf32>
    %54 = vector.shape_cast %53 : vector<1x8x256xf32> to vector<8x256xf32>
    %55 = arith.addf %51, %54 : vector<8x256xf32>
    %56 = math.tanh %55 : vector<8x256xf32>
    %57 = vector.extract_strided_slice %56 {offsets = [0, 128], sizes = [8, 128], strides = [1, 1]} : vector<8x256xf32> to vector<8x128xf32>
    %c1_i32_45 = arith.constant 1 : i32
    %58 = arith.subi %c3_i32, %c1_i32_45 : i32
    %59 = arith.index_cast %58 : i32 to index
    %c0_46 = arith.constant 0 : index
    %c0_47 = arith.constant 0 : index
    %60 = vector.load %arg11[%59, %c0_46, %c0_47] : memref<8x8x128xf32, #tpu.memory_space<vmem>>, vector<1x8x128xf32>
    %61 = vector.shape_cast %60 : vector<1x8x128xf32> to vector<8x128xf32>
    %62 = vector.shape_cast %57 : vector<8x128xf32> to vector<1x8x128xf32>
    tpu.vector_store %arg11[%59, %c0_46, %c0_47], %62 {strides = array<i32>} : memref<8x8x128xf32, #tpu.memory_space<vmem>>, vector<1x8x128xf32>,
    %c4_i32 = arith.constant 4 : i32
    %c0_48 = arith.constant 0 : index
    %c0_49 = arith.constant 0 : index
    %63 = vector.load %arg4[%c0_48, %c0_49] : memref<256x256xf32, #tpu.memory_space<vmem>>, vector<256x256xf32>
    %cst_50 = arith.constant dense<0.000000e+00> : vector<8x256xf32>
    %64 = tpu.matmul %56, %63, %cst_50 {dimension_numbers = #tpu.dot_dimension_numbers<[1], [0], [0], [1], [0, 0, 1, 1], [], []>} : vector<8x256xf32>, vector<256x256xf32>, vector<8x256xf32> -> vector<8x256xf32>
    %65 = arith.index_cast %c4_i32 : i32 to index
    %c0_51 = arith.constant 0 : index
    %c0_52 = arith.constant 0 : index
    %66 = vector.load %arg10[%65, %c0_51, %c0_52] : memref<8x8x256xf32, #tpu.memory_space<vmem>>, vector<1x8x256xf32>
    %67 = vector.shape_cast %66 : vector<1x8x256xf32> to vector<8x256xf32>
    %68 = arith.addf %64, %67 : vector<8x256xf32>
    %69 = math.tanh %68 : vector<8x256xf32>
    %70 = vector.extract_strided_slice %69 {offsets = [0, 128], sizes = [8, 128], strides = [1, 1]} : vector<8x256xf32> to vector<8x128xf32>
    %c1_i32_53 = arith.constant 1 : i32
    %71 = arith.subi %c4_i32, %c1_i32_53 : i32
    %72 = arith.index_cast %71 : i32 to index
    %c0_54 = arith.constant 0 : index
    %c0_55 = arith.constant 0 : index
    %73 = vector.load %arg11[%72, %c0_54, %c0_55] : memref<8x8x128xf32, #tpu.memory_space<vmem>>, vector<1x8x128xf32>
    %74 = vector.shape_cast %73 : vector<1x8x128xf32> to vector<8x128xf32>
    %75 = vector.shape_cast %70 : vector<8x128xf32> to vector<1x8x128xf32>
    tpu.vector_store %arg11[%72, %c0_54, %c0_55], %75 {strides = array<i32>} : memref<8x8x128xf32, #tpu.memory_space<vmem>>, vector<1x8x128xf32>,
    %c5_i32 = arith.constant 5 : i32
    %c0_56 = arith.constant 0 : index
    %c0_57 = arith.constant 0 : index
    %76 = vector.load %arg4[%c0_56, %c0_57] : memref<256x256xf32, #tpu.memory_space<vmem>>, vector<256x256xf32>
    %cst_58 = arith.constant dense<0.000000e+00> : vector<8x256xf32>
    %77 = tpu.matmul %69, %76, %cst_58 {dimension_numbers = #tpu.dot_dimension_numbers<[1], [0], [0], [1], [0, 0, 1, 1], [], []>} : vector<8x256xf32>, vector<256x256xf32>, vector<8x256xf32> -> vector<8x256xf32>
    %78 = arith.index_cast %c5_i32 : i32 to index
    %c0_59 = arith.constant 0 : index
    %c0_60 = arith.constant 0 : index
    %79 = vector.load %arg10[%78, %c0_59, %c0_60] : memref<8x8x256xf32, #tpu.memory_space<vmem>>, vector<1x8x256xf32>
    %80 = vector.shape_cast %79 : vector<1x8x256xf32> to vector<8x256xf32>
    %81 = arith.addf %77, %80 : vector<8x256xf32>
    %82 = math.tanh %81 : vector<8x256xf32>
    %83 = vector.extract_strided_slice %82 {offsets = [0, 128], sizes = [8, 128], strides = [1, 1]} : vector<8x256xf32> to vector<8x128xf32>
    %c1_i32_61 = arith.constant 1 : i32
    %84 = arith.subi %c5_i32, %c1_i32_61 : i32
    %85 = arith.index_cast %84 : i32 to index
    %c0_62 = arith.constant 0 : index
    %c0_63 = arith.constant 0 : index
    %86 = vector.load %arg11[%85, %c0_62, %c0_63] : memref<8x8x128xf32, #tpu.memory_space<vmem>>, vector<1x8x128xf32>
    %87 = vector.shape_cast %86 : vector<1x8x128xf32> to vector<8x128xf32>
    %88 = vector.shape_cast %83 : vector<8x128xf32> to vector<1x8x128xf32>
    tpu.vector_store %arg11[%85, %c0_62, %c0_63], %88 {strides = array<i32>} : memref<8x8x128xf32, #tpu.memory_space<vmem>>, vector<1x8x128xf32>,
    %c6_i32 = arith.constant 6 : i32
    %c0_64 = arith.constant 0 : index
    %c0_65 = arith.constant 0 : index
    %89 = vector.load %arg4[%c0_64, %c0_65] : memref<256x256xf32, #tpu.memory_space<vmem>>, vector<256x256xf32>
    %cst_66 = arith.constant dense<0.000000e+00> : vector<8x256xf32>
    %90 = tpu.matmul %82, %89, %cst_66 {dimension_numbers = #tpu.dot_dimension_numbers<[1], [0], [0], [1], [0, 0, 1, 1], [], []>} : vector<8x256xf32>, vector<256x256xf32>, vector<8x256xf32> -> vector<8x256xf32>
    %91 = arith.index_cast %c6_i32 : i32 to index
    %c0_67 = arith.constant 0 : index
    %c0_68 = arith.constant 0 : index
    %92 = vector.load %arg10[%91, %c0_67, %c0_68] : memref<8x8x256xf32, #tpu.memory_space<vmem>>, vector<1x8x256xf32>
    %93 = vector.shape_cast %92 : vector<1x8x256xf32> to vector<8x256xf32>
    %94 = arith.addf %90, %93 : vector<8x256xf32>
    %95 = math.tanh %94 : vector<8x256xf32>
    %96 = vector.extract_strided_slice %95 {offsets = [0, 128], sizes = [8, 128], strides = [1, 1]} : vector<8x256xf32> to vector<8x128xf32>
    %c1_i32_69 = arith.constant 1 : i32
    %97 = arith.subi %c6_i32, %c1_i32_69 : i32
    %98 = arith.index_cast %97 : i32 to index
    %c0_70 = arith.constant 0 : index
    %c0_71 = arith.constant 0 : index
    %99 = vector.load %arg11[%98, %c0_70, %c0_71] : memref<8x8x128xf32, #tpu.memory_space<vmem>>, vector<1x8x128xf32>
    %100 = vector.shape_cast %99 : vector<1x8x128xf32> to vector<8x128xf32>
    %101 = vector.shape_cast %96 : vector<8x128xf32> to vector<1x8x128xf32>
    tpu.vector_store %arg11[%98, %c0_70, %c0_71], %101 {strides = array<i32>} : memref<8x8x128xf32, #tpu.memory_space<vmem>>, vector<1x8x128xf32>,
    %c7_i32 = arith.constant 7 : i32
    %c0_72 = arith.constant 0 : index
    %c0_73 = arith.constant 0 : index
    %102 = vector.load %arg4[%c0_72, %c0_73] : memref<256x256xf32, #tpu.memory_space<vmem>>, vector<256x256xf32>
    %cst_74 = arith.constant dense<0.000000e+00> : vector<8x256xf32>
    %103 = tpu.matmul %95, %102, %cst_74 {dimension_numbers = #tpu.dot_dimension_numbers<[1], [0], [0], [1], [0, 0, 1, 1], [], []>} : vector<8x256xf32>, vector<256x256xf32>, vector<8x256xf32> -> vector<8x256xf32>
    %104 = arith.index_cast %c7_i32 : i32 to index
    %c0_75 = arith.constant 0 : index
    %c0_76 = arith.constant 0 : index
    %105 = vector.load %arg10[%104, %c0_75, %c0_76] : memref<8x8x256xf32, #tpu.memory_space<vmem>>, vector<1x8x256xf32>
    %106 = vector.shape_cast %105 : vector<1x8x256xf32> to vector<8x256xf32>
    %107 = arith.addf %103, %106 : vector<8x256xf32>
    %108 = math.tanh %107 : vector<8x256xf32>
    %109 = vector.extract_strided_slice %108 {offsets = [0, 128], sizes = [8, 128], strides = [1, 1]} : vector<8x256xf32> to vector<8x128xf32>
    %c1_i32_77 = arith.constant 1 : i32
    %110 = arith.subi %c7_i32, %c1_i32_77 : i32
    %111 = arith.index_cast %110 : i32 to index
    %c0_78 = arith.constant 0 : index
    %c0_79 = arith.constant 0 : index
    %112 = vector.load %arg11[%111, %c0_78, %c0_79] : memref<8x8x128xf32, #tpu.memory_space<vmem>>, vector<1x8x128xf32>
    %113 = vector.shape_cast %112 : vector<1x8x128xf32> to vector<8x128xf32>
    %114 = vector.shape_cast %109 : vector<8x128xf32> to vector<1x8x128xf32>
    tpu.vector_store %arg11[%111, %c0_78, %c0_79], %114 {strides = array<i32>} : memref<8x8x128xf32, #tpu.memory_space<vmem>>, vector<1x8x128xf32>,
    %c7_i32_80 = arith.constant 7 : i32
    %c0_81 = arith.constant 0 : index
    %c128_82 = arith.constant 128 : index
    %115 = vector.load %arg4[%c0_81, %c128_82] : memref<256x256xf32, #tpu.memory_space<vmem>>, vector<256x128xf32>
    %cst_83 = arith.constant dense<0.000000e+00> : vector<8x128xf32>
    %116 = tpu.matmul %108, %115, %cst_83 {dimension_numbers = #tpu.dot_dimension_numbers<[1], [0], [0], [1], [0, 0, 1, 1], [], []>} : vector<8x256xf32>, vector<256x128xf32>, vector<8x128xf32> -> vector<8x128xf32>
    %c0_84 = arith.constant 0 : index
    %c0_85 = arith.constant 0 : index
    %117 = vector.load %arg5[%c0_84, %c0_85] : memref<1x128xf32, #tpu.memory_space<vmem>>, vector<1x128xf32>
    %118 = vector.broadcast %117 : vector<1x128xf32> to vector<8x128xf32>
    %119 = arith.addf %116, %118 : vector<8x128xf32>
    %120 = math.tanh %119 : vector<8x128xf32>
    %c7 = arith.constant 7 : index
    %c0_86 = arith.constant 0 : index
    %c0_87 = arith.constant 0 : index
    %121 = vector.load %arg11[%c7, %c0_86, %c0_87] : memref<8x8x128xf32, #tpu.memory_space<vmem>>, vector<1x8x128xf32>
    %122 = vector.shape_cast %121 : vector<1x8x128xf32> to vector<8x128xf32>
    %123 = vector.shape_cast %120 : vector<8x128xf32> to vector<1x8x128xf32>
    tpu.vector_store %arg11[%c7, %c0_86, %c0_87], %123 {strides = array<i32>} : memref<8x8x128xf32, #tpu.memory_space<vmem>>, vector<1x8x128xf32>,
    %124 = vector.extract_strided_slice %108 {offsets = [0, 0], sizes = [8, 128], strides = [1, 1]} : vector<8x256xf32> to vector<8x128xf32>
    %c0_88 = arith.constant 0 : index
    %c0_89 = arith.constant 0 : index
    %c0_90 = arith.constant 0 : index
    %125 = vector.load %arg9[%c0_88, %c0_89, %c0_90] : memref<2x8x128xf32, #tpu.memory_space<vmem>>, vector<1x8x128xf32>
    %126 = vector.shape_cast %125 : vector<1x8x128xf32> to vector<8x128xf32>
    %127 = vector.shape_cast %124 : vector<8x128xf32> to vector<1x8x128xf32>
    tpu.vector_store %arg9[%c0_88, %c0_89, %c0_90], %127 {strides = array<i32>} : memref<2x8x128xf32, #tpu.memory_space<vmem>>, vector<1x8x128xf32>,
    %c1_91 = arith.constant 1 : index
    %c0_92 = arith.constant 0 : index
    %c0_93 = arith.constant 0 : index
    %128 = vector.load %arg9[%c1_91, %c0_92, %c0_93] : memref<2x8x128xf32, #tpu.memory_space<vmem>>, vector<1x8x128xf32>
    %129 = vector.shape_cast %128 : vector<1x8x128xf32> to vector<8x128xf32>
    %130 = vector.shape_cast %120 : vector<8x128xf32> to vector<1x8x128xf32>
    tpu.vector_store %arg9[%c1_91, %c0_92, %c0_93], %130 {strides = array<i32>} : memref<2x8x128xf32, #tpu.memory_space<vmem>>, vector<1x8x128xf32>,
    %c0_94 = arith.constant 0 : index
    %c0_95 = arith.constant 0 : index
    %c0_96 = arith.constant 0 : index
    %131 = vector.load %arg11[%c0_94, %c0_95, %c0_96] : memref<8x8x128xf32, #tpu.memory_space<vmem>>, vector<8x8x128xf32>
    %132 = vector.shape_cast %131 : vector<8x8x128xf32> to vector<64x128xf32>
    %c0_97 = arith.constant 0 : index
    %c0_98 = arith.constant 0 : index
    %133 = vector.load %arg6[%c0_97, %c0_98] : memref<128x128xf32, #tpu.memory_space<vmem>>, vector<128x128xf32>
    %cst_99 = arith.constant dense<0.000000e+00> : vector<64x128xf32>
    %134 = tpu.matmul %132, %133, %cst_99 {dimension_numbers = #tpu.dot_dimension_numbers<[1], [0], [0], [1], [0, 0, 1, 1], [], []>} : vector<64x128xf32>, vector<128x128xf32>, vector<64x128xf32> -> vector<64x128xf32>
    %c0_100 = arith.constant 0 : index
    %c0_101 = arith.constant 0 : index
    %135 = vector.load %arg7[%c0_100, %c0_101] : memref<1x128xf32, #tpu.memory_space<vmem>>, vector<1x128xf32>
    %136 = vector.broadcast %135 : vector<1x128xf32> to vector<64x128xf32>
    %137 = arith.addf %134, %136 : vector<64x128xf32>
    %138 = vector.shape_cast %137 : vector<64x128xf32> to vector<8x8x128xf32>
    %139 = vector.extract_strided_slice %138 {offsets = [0, 0, 0], sizes = [1, 8, 128], strides = [1, 1, 1]} : vector<8x8x128xf32> to vector<1x8x128xf32>
    %140 = vector.shape_cast %139 : vector<1x8x128xf32> to vector<8x128xf32>
    %c0_102 = arith.constant 0 : index
    %c0_103 = arith.constant 0 : index
    %c0_104 = arith.constant 0 : index
    %141 = vector.load %arg8[%c0_102, %c0_103, %c0_104] : memref<8x8x128xf32, #tpu.memory_space<vmem>>, vector<8x1x128xf32>
    %142 = vector.shape_cast %141 : vector<8x1x128xf32> to vector<8x128xf32>
    %143 = vector.shape_cast %140 : vector<8x128xf32> to vector<8x1x128xf32>
    tpu.vector_store %arg8[%c0_102, %c0_103, %c0_104], %143 {strides = array<i32>} : memref<8x8x128xf32, #tpu.memory_space<vmem>>, vector<8x1x128xf32>,
    %144 = vector.extract_strided_slice %138 {offsets = [1, 0, 0], sizes = [1, 8, 128], strides = [1, 1, 1]} : vector<8x8x128xf32> to vector<1x8x128xf32>
    %145 = vector.shape_cast %144 : vector<1x8x128xf32> to vector<8x128xf32>
    %c0_105 = arith.constant 0 : index
    %c1_106 = arith.constant 1 : index
    %c0_107 = arith.constant 0 : index
    %146 = vector.load %arg8[%c0_105, %c1_106, %c0_107] : memref<8x8x128xf32, #tpu.memory_space<vmem>>, vector<8x1x128xf32>
    %147 = vector.shape_cast %146 : vector<8x1x128xf32> to vector<8x128xf32>
    %148 = vector.shape_cast %145 : vector<8x128xf32> to vector<8x1x128xf32>
    tpu.vector_store %arg8[%c0_105, %c1_106, %c0_107], %148 {strides = array<i32>} : memref<8x8x128xf32, #tpu.memory_space<vmem>>, vector<8x1x128xf32>,
    %149 = vector.extract_strided_slice %138 {offsets = [2, 0, 0], sizes = [1, 8, 128], strides = [1, 1, 1]} : vector<8x8x128xf32> to vector<1x8x128xf32>
    %150 = vector.shape_cast %149 : vector<1x8x128xf32> to vector<8x128xf32>
    %c0_108 = arith.constant 0 : index
    %c2 = arith.constant 2 : index
    %c0_109 = arith.constant 0 : index
    %151 = vector.load %arg8[%c0_108, %c2, %c0_109] : memref<8x8x128xf32, #tpu.memory_space<vmem>>, vector<8x1x128xf32>
    %152 = vector.shape_cast %151 : vector<8x1x128xf32> to vector<8x128xf32>
    %153 = vector.shape_cast %150 : vector<8x128xf32> to vector<8x1x128xf32>
    tpu.vector_store %arg8[%c0_108, %c2, %c0_109], %153 {strides = array<i32>} : memref<8x8x128xf32, #tpu.memory_space<vmem>>, vector<8x1x128xf32>,
    %154 = vector.extract_strided_slice %138 {offsets = [3, 0, 0], sizes = [1, 8, 128], strides = [1, 1, 1]} : vector<8x8x128xf32> to vector<1x8x128xf32>
    %155 = vector.shape_cast %154 : vector<1x8x128xf32> to vector<8x128xf32>
    %c0_110 = arith.constant 0 : index
    %c3 = arith.constant 3 : index
    %c0_111 = arith.constant 0 : index
    %156 = vector.load %arg8[%c0_110, %c3, %c0_111] : memref<8x8x128xf32, #tpu.memory_space<vmem>>, vector<8x1x128xf32>
    %157 = vector.shape_cast %156 : vector<8x1x128xf32> to vector<8x128xf32>
    %158 = vector.shape_cast %155 : vector<8x128xf32> to vector<8x1x128xf32>
    tpu.vector_store %arg8[%c0_110, %c3, %c0_111], %158 {strides = array<i32>} : memref<8x8x128xf32, #tpu.memory_space<vmem>>, vector<8x1x128xf32>,
    %159 = vector.extract_strided_slice %138 {offsets = [4, 0, 0], sizes = [1, 8, 128], strides = [1, 1, 1]} : vector<8x8x128xf32> to vector<1x8x128xf32>
    %160 = vector.shape_cast %159 : vector<1x8x128xf32> to vector<8x128xf32>
    %c0_112 = arith.constant 0 : index
    %c4 = arith.constant 4 : index
    %c0_113 = arith.constant 0 : index
    %161 = vector.load %arg8[%c0_112, %c4, %c0_113] : memref<8x8x128xf32, #tpu.memory_space<vmem>>, vector<8x1x128xf32>
    %162 = vector.shape_cast %161 : vector<8x1x128xf32> to vector<8x128xf32>
    %163 = vector.shape_cast %160 : vector<8x128xf32> to vector<8x1x128xf32>
    tpu.vector_store %arg8[%c0_112, %c4, %c0_113], %163 {strides = array<i32>} : memref<8x8x128xf32, #tpu.memory_space<vmem>>, vector<8x1x128xf32>,
    %164 = vector.extract_strided_slice %138 {offsets = [5, 0, 0], sizes = [1, 8, 128], strides = [1, 1, 1]} : vector<8x8x128xf32> to vector<1x8x128xf32>
    %165 = vector.shape_cast %164 : vector<1x8x128xf32> to vector<8x128xf32>
    %c0_114 = arith.constant 0 : index
    %c5 = arith.constant 5 : index
    %c0_115 = arith.constant 0 : index
    %166 = vector.load %arg8[%c0_114, %c5, %c0_115] : memref<8x8x128xf32, #tpu.memory_space<vmem>>, vector<8x1x128xf32>
    %167 = vector.shape_cast %166 : vector<8x1x128xf32> to vector<8x128xf32>
    %168 = vector.shape_cast %165 : vector<8x128xf32> to vector<8x1x128xf32>
    tpu.vector_store %arg8[%c0_114, %c5, %c0_115], %168 {strides = array<i32>} : memref<8x8x128xf32, #tpu.memory_space<vmem>>, vector<8x1x128xf32>,
    %169 = vector.extract_strided_slice %138 {offsets = [6, 0, 0], sizes = [1, 8, 128], strides = [1, 1, 1]} : vector<8x8x128xf32> to vector<1x8x128xf32>
    %170 = vector.shape_cast %169 : vector<1x8x128xf32> to vector<8x128xf32>
    %c0_116 = arith.constant 0 : index
    %c6 = arith.constant 6 : index
    %c0_117 = arith.constant 0 : index
    %171 = vector.load %arg8[%c0_116, %c6, %c0_117] : memref<8x8x128xf32, #tpu.memory_space<vmem>>, vector<8x1x128xf32>
    %172 = vector.shape_cast %171 : vector<8x1x128xf32> to vector<8x128xf32>
    %173 = vector.shape_cast %170 : vector<8x128xf32> to vector<8x1x128xf32>
    tpu.vector_store %arg8[%c0_116, %c6, %c0_117], %173 {strides = array<i32>} : memref<8x8x128xf32, #tpu.memory_space<vmem>>, vector<8x1x128xf32>,
    %174 = vector.extract_strided_slice %138 {offsets = [7, 0, 0], sizes = [1, 8, 128], strides = [1, 1, 1]} : vector<8x8x128xf32> to vector<1x8x128xf32>
    %175 = vector.shape_cast %174 : vector<1x8x128xf32> to vector<8x128xf32>
    %c0_118 = arith.constant 0 : index
    %c7_119 = arith.constant 7 : index
    %c0_120 = arith.constant 0 : index
    %176 = vector.load %arg8[%c0_118, %c7_119, %c0_120] : memref<8x8x128xf32, #tpu.memory_space<vmem>>, vector<8x1x128xf32>
    %177 = vector.shape_cast %176 : vector<8x1x128xf32> to vector<8x128xf32>
    %178 = vector.shape_cast %175 : vector<8x128xf32> to vector<8x1x128xf32>
    tpu.vector_store %arg8[%c0_118, %c7_119, %c0_120], %178 {strides = array<i32>} : memref<8x8x128xf32, #tpu.memory_space<vmem>>, vector<8x1x128xf32>,
    return
  }
}

</mosaic_0001>

<bundles_post_ra>
// kernel: tpu_custom_call.1
= control target key start
LH: loop header
LB: loop body
LE: loop exit
PB: predicated region body
PF: predicated region fallthrough
CT: control target
= control target key end

     0   :  { %15 = vsyncpa [#allocation5], 0  ;;  %s3880_s0 = inlined_call_operand.hbm [shape: f32[8,8,128], index: 0, kind: input, shape index: {}]   ;;  %s3881_s1 = inlined_call_operand.hbm [shape: f32[2,8,128], index: 1, kind: input, shape index: {}]   ;;  %s3882_s2 = inlined_call_operand.hbm [shape: f32[128,128], index: 2, kind: input, shape index: {}]   ;;  %s3883_s3 = inlined_call_operand.vmem [shape: f32[1,128], index: 3, kind: input, shape index: {}]   ;;  %s3884_s4 = inlined_call_operand.hbm [shape: f32[256,256], index: 4, kind: input, shape index: {}]   ;;  %s3885_s5 = inlined_call_operand.vmem [shape: f32[1,128], index: 5, kind: input, shape index: {}]   ;;  %s3886_s6 = inlined_call_operand.hbm [shape: f32[128,128], index: 6, kind: input, shape index: {}]   ;;  %s3887_s7 = inlined_call_operand.vmem [shape: f32[1,128], index: 7, kind: input, shape index: {}]   ;;  %s3888_s8 = inlined_call_operand.hbm [shape: f32[8,8,128], index: 8, kind: output, shape index: {0}]   ;;  %s3889_s9 = inlined_call_operand.hbm [shape: f32[2,8,128], index: 9, kind: output, shape index: {1}]  }
   0x1   :  { %16 = vsyncpa [#allocation8], 0 }
   0x2   :  { %17 = vsyncpa [#allocation11], 0 }
   0x3   :  { %18 = vsyncpa [#allocation6], 0 }
   0x4   :  { %19 = vsyncpa [#allocation15], 0  ;;  %s3196_s30 = smov [#allocation7]   ;;  %s3197_s11 = smov [#allocation10]  }
   0x5   :  { %s37_s10 = sshll.u32 %s3196_s30, 4  ;;  %s63_s12 = sshll.u32 %s3197_s11, 4  ;;  %s38_s10 = int_to_ptr.vmem [resolvable:$true] %s37_s10  ;;  %s3261_s12 = int_to_ptr.vmem [resolvable:$true] %s63_s12 }
   0x6   :  { %s3032_s15 = scalar_lea.hbm %s3881_s1, 256 }
   0x7   :  { %p3033_p0 = scmp.ne.s32.totalorder %s3881_s1, %s3032_s15  ;;  %p3036_p1 = scmp.lt.u32.totalorder %s3032_s15, %s3881_s1 }
   0x9   :  { %p3038_p2 = pnand %p3036_p1, %p3033_p0 }
   0xb   :  { %3041 = shalt.err (!%p3038_p2)
}
   0xc   :  { %s3042_s20 = scalar_lea.vmem %s38_s10, 256  ;;  %p3047_p4 = scmp.lt.s32.totalorder %s38_s10, %s38_s10 }
   0xd   :  { %p3043_p3 = scmp.ne.s32.totalorder %s38_s10, %s3042_s20  ;;  %p3048_p5 = scmp.lt.s32.totalorder %s3042_s20, %s3042_s20 }
   0xf   :  { %p3049_p6 = por %p3048_p5, %p3047_p4 }
  0x11   :  { %p3050_p7 = pnand %p3049_p6, %p3043_p3 }
  0x13   :  { %3053 = shalt.err (!%p3050_p7)
}
  0x14   :  { %s3198_s21 = smov 128   ;;  %s3199_s22 = smov 8  }
  0x15   :  { %43 = dma.hbm_to_vmem [thread:$0]  %s3881_s1, 256, %s38_s10, [#allocation8], %s3198_s21, %s3198_s21, %s3199_s22  }
  0x16   :  { %s3054_s27 = scalar_lea.hbm %s3884_s4, 8192 }
  0x17   :  { %p3055_p8 = scmp.ne.s32.totalorder %s3884_s4, %s3054_s27  ;;  %p3058_p9 = scmp.lt.u32.totalorder %s3054_s27, %s3884_s4 }
  0x19   :  { %p3060_p10 = pnand %p3058_p9, %p3055_p8 }
  0x1b   :  { %3063 = shalt.err (!%p3060_p10)
}
  0x1c   :  { %s3064_s13 = scalar_lea.vmem %s3261_s12, 8192  ;;  %p3069_p12 = scmp.lt.s32.totalorder %s3261_s12, %s3261_s12 }
  0x1d   :  { %p3065_p11 = scmp.ne.s32.totalorder %s3261_s12, %s3064_s13  ;;  %p3070_p13 = scmp.lt.s32.totalorder %s3064_s13, %s3064_s13 }
  0x1f   :  { %p3071_p0 = por %p3070_p13, %p3069_p12 }
  0x21   :  { %p3072_p1 = pnand %p3071_p0, %p3065_p11 }
  0x23   :  { %3075 = shalt.err (!%p3072_p1)
}
  0x24   :  { %s3200_s1 = smov 256   ;;  %s3201_s10 = smov 16  }
  0x25   :  { %69 = dma.hbm_to_vmem [thread:$0]  %s3884_s4, 8192, %s3261_s12, [#allocation11], %s3200_s1, %s3200_s1, %s3201_s10  }
  0x26   :  { %s3202_s16 = smov [#allocation4]   ;;  %s3203_s18 = smov [#allocation9]  }
  0x27   :  { %s25_s17 = sshll.u32 %s3202_s16, 4  ;;  %s49_s19 = sshll.u32 %s3203_s18, 4  ;;  %s26_s17 = int_to_ptr.vmem [resolvable:$true] %s25_s17  ;;  %s3295_s19 = int_to_ptr.vmem [resolvable:$true] %s49_s19 }
  0x28   :  { %s3076_s24 = scalar_lea.hbm %s3880_s0, 1024 }
  0x29   :  { %p3077_p2 = scmp.ne.s32.totalorder %s3880_s0, %s3076_s24  ;;  %p3080_p3 = scmp.lt.u32.totalorder %s3076_s24, %s3880_s0 }
  0x2b   :  { %p3082_p4 = pnand %p3080_p3, %p3077_p2 }
  0x2d   :  { %3085 = shalt.err (!%p3082_p4)
}
  0x2e   :  { %s3086_s4 = scalar_lea.vmem %s26_s17, 1024  ;;  %p3091_p6 = scmp.lt.s32.totalorder %s26_s17, %s26_s17 }
  0x2f   :  { %p3087_p5 = scmp.ne.s32.totalorder %s26_s17, %s3086_s4  ;;  %p3092_p7 = scmp.lt.s32.totalorder %s3086_s4, %s3086_s4 }
  0x31   :  { %p3093_p8 = por %p3092_p7, %p3091_p6 }
  0x33   :  { %p3094_p9 = pnand %p3093_p8, %p3087_p5 }
  0x35   :  { %3097 = shalt.err (!%p3094_p9)
}
  0x36   :  { %31 = dma.hbm_to_vmem [thread:$0]  %s3880_s0, 1024, %s26_s17, [#allocation5], %s3198_s21, %s3198_s21, %s3199_s22  }
  0x37   :  { %s3098_s13 = scalar_lea.hbm %s3882_s2, 2048 }
  0x38   :  { %p3099_p10 = scmp.ne.s32.totalorder %s3882_s2, %s3098_s13  ;;  %p3102_p11 = scmp.lt.u32.totalorder %s3098_s13, %s3882_s2 }
  0x3a   :  { %p3104_p12 = pnand %p3102_p11, %p3099_p10 }
  0x3c   :  { %3107 = shalt.err (!%p3104_p12)
}
  0x3d   :  { %s3108_s16 = scalar_lea.vmem %s3295_s19, 2048  ;;  %p3113_p0 = scmp.lt.s32.totalorder %s3295_s19, %s3295_s19 }
  0x3e   :  { %p3109_p13 = scmp.ne.s32.totalorder %s3295_s19, %s3108_s16  ;;  %p3114_p1 = scmp.lt.s32.totalorder %s3108_s16, %s3108_s16 }
  0x40   :  { %p3115_p2 = por %p3114_p1, %p3113_p0 }
  0x42   :  { %p3116_p3 = pnand %p3115_p2, %p3109_p13 }
  0x44   :  { %3119 = shalt.err (!%p3116_p3)
}
  0x45   :  { %55 = dma.hbm_to_vmem [thread:$0]  %s3882_s2, 2048, %s3295_s19, [#allocation8], %s3198_s21, %s3198_s21, %s3199_s22  }
  0x46   :  { %s3204_s18 = smov [#allocation12]   ;;  %s3120_s25 = scalar_lea.hbm %s3886_s6, 2048 }
  0x47   :  { %s77_s20 = sshll.u32 %s3204_s18, 4  ;;  %p3121_p4 = scmp.ne.s32.totalorder %s3886_s6, %s3120_s25  ;;  %s78_s20 = int_to_ptr.vmem [resolvable:$true] %s77_s20 }
  0x48   :  { %p3124_p5 = scmp.lt.u32.totalorder %s3120_s25, %s3886_s6 }
  0x4a   :  { %p3126_p6 = pnand %p3124_p5, %p3121_p4 }
  0x4c   :  { %3129 = shalt.err (!%p3126_p6)
}
  0x4d   :  { %s3130_s12 = scalar_lea.vmem %s78_s20, 2048  ;;  %p3135_p8 = scmp.lt.s32.totalorder %s78_s20, %s78_s20 }
  0x4e   :  { %p3131_p7 = scmp.ne.s32.totalorder %s78_s20, %s3130_s12  ;;  %p3136_p9 = scmp.lt.s32.totalorder %s3130_s12, %s3130_s12 }
  0x50   :  { %p3137_p10 = por %p3136_p9, %p3135_p8 }
  0x52   :  { %p3138_p11 = pnand %p3137_p10, %p3131_p7 }
  0x54   :  { %3141 = shalt.err (!%p3138_p11)
}
  0x55   :  { %83 = dma.hbm_to_vmem [thread:$0]  %s3886_s6, 2048, %s78_s20, [#allocation11], %s3198_s21, %s3198_s21, %s3199_s22  }
  0x56   :  { %3186 = dma.done.wait [#allocation5], 1024  }
  0x57   :  { %3187 = vsyncadd [#allocation5], 4294966272 }
  0x58   :  { %3188 = dma.done.wait [#allocation8], 2304  }
  0x59   :  { %3189 = vsyncadd [#allocation8], 4294964992 }
  0x5a   :  { %3190 = dma.done.wait [#allocation11], 10240  }
  0x5b   :  { %3191 = vsyncadd [#allocation11], 4294957056  ;;  %v3205_v0 = vmov 0.0|0.0   ;;  %vm3206_vm0 = vmmov 0   ;;  %v3207_v1 = vmov 0.0   ;;  %v109_v2 = vld [vmem:[#allocation9] sm:$0xff] }
  0x5c   :  { %2449 = vmatprep.subr.bf16.mxu1 %v3205_v0  ;;  %2370 = vmatprep.mubr.msk.f32.mxu1 %vm3206_vm0, %v3207_v1  ;;  %v110_v3 = vld [vmem:[#allocation9 + $0x8] sm:$0xff]  ;;  %v261_v4 = vld [vmem:[#allocation10] sm:$0xff]  ;;  %v262_v6 = vld [vmem:[#allocation10 + $0x10] sm:$0xff] }
  0x5d   :  { %v2417_v5 = vpack.c.bf16 %v110_v3, %v109_v2  ;;  %v111_v7 = vld [vmem:[#allocation9 + $0x10] sm:$0xff]  ;;  %v112_v8 = vld [vmem:[#allocation9 + $0x18] sm:$0xff]  ;;  %v3348_v9 = vpack.c.bf16 %v262_v6, %v261_v4  ;;  %v263_v11 = vld [vmem:[#allocation10 + $0x20] sm:$0xff] }
  0x5e   :  { %v2421_v10 = vpack.c.bf16 %v112_v8, %v111_v7  ;;  %v264_v12 = vld [vmem:[#allocation10 + $0x30] sm:$0xff]  ;;  %v113_v13 = vld [vmem:[#allocation9 + $0x20] sm:$0xff]  ;;  %v114_v14 = vld [vmem:[#allocation9 + $0x28] sm:$0xff] }
  0x5f   :  { %2418 = vmatprep.subr.bf16.mxu0 %v2417_v5  ;;  %2451 = vmatpush3.bf16.msra.mxu1 %v3348_v9  ;;  %v3351_v15 = vpack.c.bf16 %v264_v12, %v263_v11  ;;  %v2425_v16 = vpack.c.bf16 %v114_v14, %v113_v13  ;;  %v265_v17 = vld [vmem:[#allocation10 + $0x40] sm:$0xff]  ;;  %v266_v18 = vld [vmem:[#allocation10 + $0x50] sm:$0xff]  ;;  %v116_v20 = vld [vmem:[#allocation9 + $0x38] sm:$0xff] }
  0x60   :  { %2420 = vmatpush3.bf16.msra.mxu0 %v2417_v5  ;;  %2452 = vmatprep.subr.bf16.mxu1 %v3205_v0  ;;  %v115_v19 = vld [vmem:[#allocation9 + $0x30] sm:$0xff]  ;;  %v3355_v21 = vpack.c.bf16 %v266_v18, %v265_v17  ;;  %v267_v23 = vld [vmem:[#allocation10 + $0x60] sm:$0xff]  ;;  %v118_v26 = vld [vmem:[#allocation9 + $0x48] sm:$0xff] }
  0x61   :  { %2422 = vmatprep.subr.bf16.mxu0 %v2421_v10  ;;  %v2429_v22 = vpack.c.bf16 %v116_v20, %v115_v19  ;;  %v268_v24 = vld [vmem:[#allocation10 + $0x70] sm:$0xff]  ;;  %v117_v25 = vld [vmem:[#allocation9 + $0x40] sm:$0xff]  ;;  %v120_v33 = vld [vmem:[#allocation9 + $0x58] sm:$0xff] }
  0x62   :  { %v101_v27 = vld [vmem:[#allocation4] sm:$0xff]  ;;  %v3359_v28 = vpack.c.bf16 %v268_v24, %v267_v23  ;;  %v2433_v29 = vpack.c.bf16 %v118_v26, %v117_v25  ;;  %v269_v30 = vld [vmem:[#allocation10 + $0x80] sm:$0xff]  ;;  %v122_v39 = vld [vmem:[#allocation9 + $0x68] sm:$0xff] }
  0x63   :  { %2454 = vmatpush3.bf16.msra.mxu1 %v3351_v15  ;;  %2326 = vmatprep.mubr.f32.mxu0 %v101_v27  ;;  %v270_v31 = vld [vmem:[#allocation10 + $0x90] sm:$0xff]  ;;  %v271_v36 = vld [vmem:[#allocation10 + $0xa0] sm:$0xff]  ;;  %v124_v45 = vld [vmem:[#allocation9 + $0x78] sm:$0xff] }
  0x64   :  { %2424 = vmatpush3.bf16.msra.mxu0 %v2421_v10  ;;  %2455 = vmatprep.subr.bf16.mxu1 %v3205_v0  ;;  %v119_v32 = vld [vmem:[#allocation9 + $0x50] sm:$0xff]  ;;  %v3363_v34 = vpack.c.bf16 %v270_v31, %v269_v30  ;;  %v121_v38 = vld [vmem:[#allocation9 + $0x60] sm:$0xff]  ;;  %v352_v50 = vld [vmem:[#allocation10 + $0x8] sm:$0xff] }
  0x65   :  { %2426 = vmatprep.subr.bf16.mxu0 %v2425_v16  ;;  %v2437_v35 = vpack.c.bf16 %v120_v33, %v119_v32  ;;  %v272_v37 = vld [vmem:[#allocation10 + $0xb0] sm:$0xff]  ;;  %v2441_v41 = vpack.c.bf16 %v122_v39, %v121_v38  ;;  %v273_v42 = vld [vmem:[#allocation10 + $0xc0] sm:$0xff]  ;;  %v354_v51 = vld [vmem:[#allocation10 + $0x18] sm:$0xff] }
  0x66   :  { %v3367_v40 = vpack.c.bf16 %v272_v37, %v271_v36  ;;  %v274_v43 = vld [vmem:[#allocation10 + $0xd0] sm:$0xff]  ;;  %v275_v48 = vld [vmem:[#allocation10 + $0xe0] sm:$0xff]  ;;  %v3378_v53 = vpack.c.bf16 %v354_v51, %v352_v50  ;;  %v356_v54 = vld [vmem:[#allocation10 + $0x28] sm:$0xff] }
  0x67   :  { %2457 = vmatpush3.bf16.msra.mxu1 %v3355_v21  ;;  %v123_v44 = vld [vmem:[#allocation9 + $0x70] sm:$0xff]  ;;  %v3371_v46 = vpack.c.bf16 %v274_v43, %v273_v42  ;;  %v358_v55 = vld [vmem:[#allocation10 + $0x38] sm:$0xff]  ;;  %v360_v59 = vld [vmem:[#allocation10 + $0x48] sm:$0xff] }
  0x68   :  { %2428 = vmatpush3.bf16.msra.mxu0 %v2425_v16  ;;  %2458 = vmatprep.subr.bf16.mxu1 %v3205_v0  ;;  %v2445_v47 = vpack.c.bf16 %v124_v45, %v123_v44  ;;  %v276_v49 = vld [vmem:[#allocation10 + $0xf0] sm:$0xff]  ;;  %v102_v56 = vld [vmem:[#allocation4 + $0x8] sm:$0xff]  ;;  %v3382_v58 = vpack.c.bf16 %v358_v55, %v356_v54  ;;  %v364_v62 = vld [vmem:[#allocation10 + $0x68] sm:$0xff] }
  0x69   :  { %2430 = vmatprep.subr.bf16.mxu0 %v2429_v22  ;;  %v3375_v52 = vpack.c.bf16 %v276_v49, %v275_v48  ;;  %v260_v57 = vld [vmem:[#allocation7] sm:$0xff]  ;;  %v362_v60 = vld [vmem:[#allocation10 + $0x58] sm:$0xff]  ;;  %v368_v1 = vld [vmem:[#allocation10 + $0x88] sm:$0xff] }
  0x6a   :  { %v3388_v61 = vpack.c.bf16 %v362_v60, %v360_v59  ;;  %v366_v63 = vld [vmem:[#allocation10 + $0x78] sm:$0xff]  ;;  %v372_v4 = vld [vmem:[#allocation10 + $0xa8] sm:$0xff]  ;;  %v383_v18 = vld [vmem:[#allocation10 + $0x100] sm:$0xff] }
  0x6b   :  { %2460 = vmatpush3.bf16.msra.mxu1 %v3359_v28  ;;  %v370_v2 = vld [vmem:[#allocation10 + $0x98] sm:$0xff]  ;;  %v376_v7 = vld [vmem:[#allocation10 + $0xc8] sm:$0xff]  ;;  %v385_v19 = vld [vmem:[#allocation10 + $0x110] sm:$0xff] }
  0x6c   :  { %2432 = vmatpush3.bf16.msra.mxu0 %v2429_v22  ;;  %2461 = vmatprep.subr.bf16.mxu1 %v3205_v0  ;;  %v3400_v3 = vpack.c.bf16 %v370_v2, %v368_v1  ;;  %v374_v5 = vld [vmem:[#allocation10 + $0xb8] sm:$0xff]  ;;  %v380_v11 = vld [vmem:[#allocation10 + $0xe8] sm:$0xff]  ;;  %v3428_v23 = vpack.c.bf16 %v385_v19, %v383_v18  ;;  %v387_v25 = vld [vmem:[#allocation10 + $0x120] sm:$0xff] }
  0x6d   :  { %2434 = vmatprep.subr.bf16.mxu0 %v2433_v29  ;;  %v3406_v6 = vpack.c.bf16 %v374_v5, %v372_v4  ;;  %v378_v8 = vld [vmem:[#allocation10 + $0xd8] sm:$0xff]  ;;  %v384_v14 = vld [vmem:[#allocation10 + $0x108] sm:$0xff]  ;;  %v389_v26 = vld [vmem:[#allocation10 + $0x130] sm:$0xff] }
  0x6e   :  { %v3412_v10 = vpack.c.bf16 %v378_v8, %v376_v7  ;;  %v382_v12 = vld [vmem:[#allocation10 + $0xf8] sm:$0xff]  ;;  %v388_v20 = vld [vmem:[#allocation10 + $0x128] sm:$0xff]  ;;  %v3436_v30 = vpack.c.bf16 %v389_v26, %v387_v25  ;;  %v391_v32 = vld [vmem:[#allocation10 + $0x140] sm:$0xff] }
  0x6f   :  { %2463 = vmatpush3.bf16.msra.mxu1 %v3363_v34  ;;  %v3418_v13 = vpack.c.bf16 %v382_v12, %v380_v11  ;;  %v386_v16 = vld [vmem:[#allocation10 + $0x118] sm:$0xff]  ;;  %v392_v27 = vld [vmem:[#allocation10 + $0x148] sm:$0xff]  ;;  %v393_v33 = vld [vmem:[#allocation10 + $0x150] sm:$0xff] }
  0x70   :  { %2436 = vmatpush3.bf16.msra.mxu0 %v2433_v29  ;;  %2464 = vmatprep.subr.bf16.mxu1 %v3205_v0  ;;  %v3424_v17 = vpack.c.bf16 %v386_v16, %v384_v14  ;;  %v390_v22 = vld [vmem:[#allocation10 + $0x138] sm:$0xff]  ;;  %v3444_v37 = vpack.c.bf16 %v393_v33, %v391_v32  ;;  %v395_v39 = vld [vmem:[#allocation10 + $0x160] sm:$0xff]  ;;  %v400_v43 = vld [vmem:[#allocation10 + $0x188] sm:$0xff] }
  0x71   :  { %2438 = vmatprep.subr.bf16.mxu0 %v2437_v35  ;;  %v3432_v24 = vpack.c.bf16 %v390_v22, %v388_v20  ;;  %v394_v29 = vld [vmem:[#allocation10 + $0x158] sm:$0xff]  ;;  %v401_v48 = vld [vmem:[#allocation10 + $0x190] sm:$0xff]  ;;  %v103_v50 = vld [vmem:[#allocation4 + $0x10] sm:$0xff] }
  0x72   :  { %v3440_v31 = vpack.c.bf16 %v394_v29, %v392_v27  ;;  %v398_v36 = vld [vmem:[#allocation10 + $0x178] sm:$0xff]  ;;  %v404_v51 = vld [vmem:[#allocation10 + $0x1a8] sm:$0xff]  ;;  %v405_v59 = vld [vmem:[#allocation10 + $0x1b0] sm:$0xff] }
  0x73   :  { %2466 = vmatpush3.bf16.msra.mxu1 %v3367_v40  ;;  %v402_v44 = vld [vmem:[#allocation10 + $0x198] sm:$0xff]  ;;  %v104_v55 = vld [vmem:[#allocation4 + $0x18] sm:$0xff]  ;;  %v407_v4 = vld [vmem:[#allocation10 + $0x1c0] sm:$0xff] }
  0x74   :  { %2440 = vmatpush3.bf16.msra.mxu0 %v2437_v35  ;;  %2467 = vmatprep.subr.bf16.mxu1 %v3205_v0  ;;  %v396_v35 = vld [vmem:[#allocation10 + $0x168] sm:$0xff]  ;;  %v3459_v45 = vpack.c.bf16 %v402_v44, %v400_v43  ;;  %v406_v54 = vld [vmem:[#allocation10 + $0x1b8] sm:$0xff]  ;;  %v409_v5 = vld [vmem:[#allocation10 + $0x1d0] sm:$0xff] }
  0x75   :  { %2442 = vmatprep.subr.bf16.mxu0 %v2441_v41  ;;  %v3448_v38 = vpack.c.bf16 %v398_v36, %v396_v35  ;;  %v408_v1 = vld [vmem:[#allocation10 + $0x1c8] sm:$0xff]  ;;  %v410_v2 = vld [vmem:[#allocation10 + $0x1d8] sm:$0xff]  ;;  %v3477_v8 = vpack.c.bf16 %v409_v5, %v407_v4  ;;  %v107_v11 = vld [vmem:[#allocation4 + $0x30] sm:$0xff] }
  0x76   :  { %v3475_v7 = vpack.c.bf16 %v410_v2, %v408_v1  ;;  %v108_v12 = vld [vmem:[#allocation4 + $0x38] sm:$0xff]  ;;  %v414_v16 = vld [vmem:[#allocation10 + $0x1f8] sm:$0xff]  ;;  %v411_v18 = vld [vmem:[#allocation10 + $0x1e0] sm:$0xff] }
  0x77   :  { %2469 = vmatpush3.bf16.msra.mxu1 %v3371_v46  ;;  %v412_v14 = vld [vmem:[#allocation10 + $0x1e8] sm:$0xff]  ;;  %v413_v19 = vld [vmem:[#allocation10 + $0x1f0] sm:$0xff]  ;;  %v350_v22 = vld [vmem:[#allocation7 + $0x8] sm:$0xff] }
  0x78   :  { %2444 = vmatpush3.bf16.msra.mxu0 %v2441_v41  ;;  %2470 = vmatprep.subr.bf16.mxu1 %v3205_v0  ;;  %v3394_v0 = vpack.c.bf16 %v366_v63, %v364_v62  ;;  %v397_v41 = vld [vmem:[#allocation10 + $0x170] sm:$0xff]  ;;  %v106_v63 = vld [vmem:[#allocation4 + $0x28] sm:$0xff]  ;;  %v3480_v20 = vpack.c.bf16 %v414_v16, %v412_v14  ;;  %v3484_v25 = vpack.c.bf16 %v413_v19, %v411_v18  ;;  %v784_v1 = vld [vmem:[#allocation10 + $0x40] sm:$0xff] }
  0x79   :  { %2446 = vmatprep.subr.bf16.mxu0 %v2445_v47  ;;  %v3452_v42 = vpack.c.bf16 %v397_v41, %v395_v39  ;;  %v105_v62 = vld [vmem:[#allocation4 + $0x20] sm:$0xff]  ;;  %v788_v5 = vld [vmem:[#allocation10 + $0x60] sm:$0xff] }
  0x7a   :  { %v3496_v26 = vld [vmem:[%s3883_s3] ss:$0 sm:$0xff]  ;;  %v792_v14 = vld [vmem:[#allocation10 + $0x80] sm:$0xff] }
  0x7b   :  { %2472 = vmatpush3.bf16.msra.mxu1 %v3375_v52  ;;  %v3546_v41 = vld [vmem:[%s3885_s5] ss:$0 sm:$0xff]  ;;  %v796_v18 = vld [vmem:[#allocation10 + $0xa0] sm:$0xff] }
  0x7c   :  { %2448 = vmatpush3.bf16.msra.mxu0 %v2445_v47  ;;  %2538 = vmatprep.subr.bf16.mxu1 %v3378_v53  ;;  %v399_v47 = vld [vmem:[#allocation10 + $0x180] sm:$0xff]  ;;  %v786_v2 = vld [vmem:[#allocation10 + $0x50] sm:$0xff] }
  0x7d   :  { %2474 = vmatprep.subr.bf16.mxu0 %v3378_v53  ;;  %v3461_v49 = vpack.c.bf16 %v401_v48, %v399_v47  ;;  %v3559_v4 = vpack.c.bf16 %v786_v2, %v784_v1  ;;  %v794_v16 = vld [vmem:[#allocation10 + $0x90] sm:$0xff]  ;;  %v955_v1 = vld [vmem:[#allocation10 + $0x128] sm:$0xff]  ;;  %v957_v2 = vld [vmem:[#allocation10 + $0x138] sm:$0xff] }
  0x7e   :  { %2371 = vmatmul.mubr.f32.vlgmr.msra.gmra.mrb[0].mxu1 %v260_v57  ;;  %v403_v57 = vld [vmem:[#allocation10 + $0x1a0] sm:$0xff]  ;;  %v798_v19 = vld [vmem:[#allocation10 + $0xb0] sm:$0xff] }
  0x7f   :  { %2327 = vmatmul.mubr.f32.vlgmr.msra.gmra.mrb[0].mxu0 %v102_v56  ;;  %2540 = vmatpush1.bf16.msra.mxu1 %v3348_v9  ;;  %v3467_v56 = vpack.c.bf16 %v406_v54, %v404_v51  ;;  %v3469_v60 = vpack.c.bf16 %v405_v59, %v403_v57  ;;  %v776_v54 = vld [vmem:[#allocation10] sm:$0xff] }
  0x80   :  { %2476 = vmatpush1.bf16.msra.mxu0 %v3348_v9  ;;  %2542 = vmatprep.subr.bf16.mxu1 %v3382_v58  ;;  %v780_v57 = vld [vmem:[#allocation10 + $0x20] sm:$0xff] }
  0x81   :  { %2478 = vmatprep.subr.bf16.mxu0 %v3382_v58  ;;  %2329 = vmatprep.mubr.f32.mxu0 %v103_v50 }
  0x83   :  { %2544 = vmatpush1.bf16.msra.mxu1 %v3351_v15  ;;  %2330 = vmatmul.mubr.f32.gmra.mrb[2].mxu0 %v104_v55  ;;  %v778_v55 = vld [vmem:[#allocation10 + $0x10] sm:$0xff] }
  0x84   :  { %2480 = vmatpush1.bf16.msra.mxu0 %v3351_v15  ;;  %2546 = vmatprep.subr.bf16.mxu1 %v3388_v61  ;;  %v3552_v59 = vpack.c.bf16 %v778_v55, %v776_v54 }
  0x85   :  { %2482 = vmatprep.subr.bf16.mxu0 %v3388_v61  ;;  %2332 = vmatprep.mubr.f32.mxu0 %v105_v62  ;;  %v782_v62 = vld [vmem:[#allocation10 + $0x30] sm:$0xff] }
  0x87   :  { %2548 = vmatpush1.bf16.msra.mxu1 %v3355_v21  ;;  %2333 = vmatmul.mubr.f32.gmra.mrb[4].mxu0 %v106_v63  ;;  %v3555_v63 = vpack.c.bf16 %v782_v62, %v780_v57  ;;  %v950_v57 = vld [vmem:[#allocation10 + $0x100] sm:$0xff]  ;;  %v952_v62 = vld [vmem:[#allocation10 + $0x110] sm:$0xff] }
  0x88   :  { %2484 = vmatpush1.bf16.msra.mxu0 %v3355_v21  ;;  %2550 = vmatprep.subr.bf16.mxu1 %v3394_v0 }
  0x89   :  { %2486 = vmatprep.subr.bf16.mxu0 %v3394_v0  ;;  %2335 = vmatprep.mubr.f32.mxu0 %v107_v11  ;;  %v790_v11 = vld [vmem:[#allocation10 + $0x70] sm:$0xff] }
  0x8b   :  { %2552 = vmatpush1.bf16.msra.mxu1 %v3359_v28  ;;  %2336 = vmatmul.mubr.f32.gmra.mrb[6].mxu0 %v108_v12  ;;  %v3563_v12 = vpack.c.bf16 %v790_v11, %v788_v5  ;;  %v3640_v5 = vpack.c.bf16 %v952_v62, %v950_v57  ;;  %v3643_v11 = vpack.c.bf16 %v957_v2, %v955_v1  ;;  %v975_v62 = vld [vmem:[#allocation10 + $0x1c8] sm:$0xff]  ;;  %v977_v1 = vld [vmem:[#allocation10 + $0x1d8] sm:$0xff]  ;;  %v974_v2 = vld [vmem:[#allocation10 + $0x1c0] sm:$0xff] }
  0x8c   :  { %2488 = vmatpush1.bf16.msra.mxu0 %v3359_v28  ;;  %2554 = vmatprep.subr.bf16.mxu1 %v3400_v3 }
  0x8d   :  { %2490 = vmatprep.subr.bf16.mxu0 %v3400_v3  ;;  %482 = vmatprep.mubr.f32.mxu0 %v350_v22  ;;  %v939_v22 = vld [vmem:[#allocation10 + $0xa8] sm:$0xff] }
  0x8f   :  { %2556 = vmatpush1.bf16.msra.mxu1 %v3363_v34 }
  0x90   :  { %2492 = vmatpush1.bf16.msra.mxu0 %v3363_v34  ;;  %2558 = vmatprep.subr.bf16.mxu1 %v3406_v6 }
  0x91   :  { %2494 = vmatprep.subr.bf16.mxu0 %v3406_v6 }
  0x93   :  { %2560 = vmatpush1.bf16.msra.mxu1 %v3367_v40 }
  0x94   :  { %2496 = vmatpush1.bf16.msra.mxu0 %v3367_v40  ;;  %2562 = vmatprep.subr.bf16.mxu1 %v3412_v10 }
  0x95   :  { %2498 = vmatprep.subr.bf16.mxu0 %v3412_v10 }
  0x97   :  { %2564 = vmatpush1.bf16.msra.mxu1 %v3371_v46 }
  0x98   :  { %2500 = vmatpush1.bf16.msra.mxu0 %v3371_v46  ;;  %2566 = vmatprep.subr.bf16.mxu1 %v3418_v13 }
  0x99   :  { %2502 = vmatprep.subr.bf16.mxu0 %v3418_v13 }
  0x9b   :  { %2568 = vmatpush1.bf16.msra.mxu1 %v3375_v52 }
  0x9c   :  { %2504 = vmatpush1.bf16.msra.mxu0 %v3375_v52  ;;  %2570 = vmatprep.subr.bf16.mxu1 %v3424_v17 }
  0x9d   :  { %2506 = vmatprep.subr.bf16.mxu0 %v3424_v17 }
  0x9f   :  { %2572 = vmatpush1.bf16.msra.mxu1 %v3428_v23 }
  0xa0   :  { %2508 = vmatpush1.bf16.msra.mxu0 %v3428_v23  ;;  %2574 = vmatprep.subr.bf16.mxu1 %v3432_v24 }
  0xa1   :  { %2510 = vmatprep.subr.bf16.mxu0 %v3432_v24 }
  0xa3   :  { %2576 = vmatpush1.bf16.msra.mxu1 %v3436_v30 }
  0xa4   :  { %2512 = vmatpush1.bf16.msra.mxu0 %v3436_v30  ;;  %2578 = vmatprep.subr.bf16.mxu1 %v3440_v31 }
  0xa5   :  { %2514 = vmatprep.subr.bf16.mxu0 %v3440_v31 }
  0xa7   :  { %2580 = vmatpush1.bf16.msra.mxu1 %v3444_v37 }
  0xa8   :  { %2516 = vmatpush1.bf16.msra.mxu0 %v3444_v37  ;;  %2582 = vmatprep.subr.bf16.mxu1 %v3448_v38 }
  0xa9   :  { %2518 = vmatprep.subr.bf16.mxu0 %v3448_v38 }
  0xab   :  { %2584 = vmatpush1.bf16.msra.mxu1 %v3452_v42 }
  0xac   :  { %2520 = vmatpush1.bf16.msra.mxu0 %v3452_v42  ;;  %2586 = vmatprep.subr.bf16.mxu1 %v3459_v45 }
  0xad   :  { %2522 = vmatprep.subr.bf16.mxu0 %v3459_v45 }
  0xaf   :  { %2588 = vmatpush1.bf16.msra.mxu1 %v3461_v49 }
  0xb0   :  { %2524 = vmatpush1.bf16.msra.mxu0 %v3461_v49  ;;  %2590 = vmatprep.subr.bf16.mxu1 %v3467_v56 }
  0xb1   :  { %2526 = vmatprep.subr.bf16.mxu0 %v3467_v56 }
  0xb3   :  { %2592 = vmatpush1.bf16.msra.mxu1 %v3469_v60 }
  0xb4   :  { %2528 = vmatpush1.bf16.msra.mxu0 %v3469_v60  ;;  %2594 = vmatprep.subr.bf16.mxu1 %v3475_v7 }
  0xb5   :  { %2530 = vmatprep.subr.bf16.mxu0 %v3475_v7 }
  0xb7   :  { %2596 = vmatpush1.bf16.msra.mxu1 %v3477_v8 }
  0xb8   :  { %2532 = vmatpush1.bf16.msra.mxu0 %v3477_v8  ;;  %2598 = vmatprep.subr.bf16.mxu1 %v3480_v20 }
  0xb9   :  { %2534 = vmatprep.subr.bf16.mxu0 %v3480_v20 }
  0xbb   :  { %2600 = vmatpush1.bf16.msra.mxu1 %v3484_v25 }
  0xbc   :  { %2536 = vmatpush1.bf16.msra.mxu0 %v3484_v25  ;;  %2666 = vmatprep.subr.bf16.mxu1 %v3378_v53 }
  0xbd   :  { %2602 = vmatprep.subr.bf16.mxu0 %v3378_v53 }
 0x151   :  { %v344_v29 = vpop.f32.mrb[0].mxu1 }
 0x152   :  { %v2328_v27 = vpop.f32.mrb[0].mxu0  ;;  %v2372_v33 = vpop.f32.mrb[1].mxu1 }
 0x153   :  { %v198_v32 = vpop.f32.mrb[1].mxu0  ;;  %v204_v53 = vadd.f32 %v2328_v27, %v3496_v26 }
 0x154   :  { %v199_v35 = vadd.f32 %v3496_v26, %v198_v32  ;;  %v945_v32 = vld [vmem:[#allocation10 + $0xd8] sm:$0xff] }
 0x156   :  { %v345_v36 = vadd.f32 %v344_v29, %v199_v35  ;;  %v943_v29 = vld [vmem:[#allocation10 + $0xc8] sm:$0xff]  ;;  %v942_v35 = vld [vmem:[#allocation10 + $0xc0] sm:$0xff] }
 0x157   :  { %v3625_v33 = vpack.c.bf16 %v945_v32, %v943_v29  ;;  %v969_v29 = vld [vmem:[#allocation10 + $0x198] sm:$0xff] }
 0x158   :  { %3000 = vtanh.f32 %v345_v36  ;;  %v944_v36 = vld [vmem:[#allocation10 + $0xd0] sm:$0xff] }
 0x162   :  { %v3001_v39 = vpop.eup %3000 }
 0x163   :  { %483 = vmatmul.mubr.f32.vlgmr.msra.gmra.mrb[8].mxu0 %v3001_v39  ;;  %v947_v39 = vld [vmem:[#allocation10 + $0xe8] sm:$0xff] }
 0x164   :  { %2604 = vmatpush1.bf16.msra.mxu0 %v3348_v9  ;;  %v3530_v9 = vpop.f32.mrb[2].mxu0 }
 0x165   :  { %2606 = vmatprep.subr.bf16.mxu0 %v3382_v58 }
 0x168   :  { %2608 = vmatpush1.bf16.msra.mxu0 %v3351_v15  ;;  %v3532_v15 = vpop.f32.mrb[3].mxu0 }
 0x169   :  { %2610 = vmatprep.subr.bf16.mxu0 %v3388_v61 }
 0x16c   :  { %2612 = vmatpush1.bf16.msra.mxu0 %v3355_v21  ;;  %v3534_v21 = vpop.f32.mrb[4].mxu0 }
 0x16d   :  { %2614 = vmatprep.subr.bf16.mxu0 %v3394_v0 }
 0x170   :  { %2616 = vmatpush1.bf16.msra.mxu0 %v3359_v28  ;;  %v3536_v28 = vpop.f32.mrb[5].mxu0 }
 0x171   :  { %2618 = vmatprep.subr.bf16.mxu0 %v3400_v3 }
 0x174   :  { %2620 = vmatpush1.bf16.msra.mxu0 %v3363_v34  ;;  %v3538_v34 = vpop.f32.mrb[6].mxu0 }
 0x175   :  { %2622 = vmatprep.subr.bf16.mxu0 %v3406_v6 }
 0x178   :  { %2624 = vmatpush1.bf16.msra.mxu0 %v3367_v40  ;;  %v3540_v40 = vpop.f32.mrb[7].mxu0 }
 0x179   :  { %2626 = vmatprep.subr.bf16.mxu0 %v3412_v10 }
 0x17c   :  { %2628 = vmatpush1.bf16.msra.mxu0 %v3371_v46 }
 0x17d   :  { %2630 = vmatprep.subr.bf16.mxu0 %v3418_v13 }
 0x180   :  { %2632 = vmatpush1.bf16.msra.mxu0 %v3375_v52 }
 0x181   :  { %2634 = vmatprep.subr.bf16.mxu0 %v3424_v17 }
 0x184   :  { %2636 = vmatpush1.bf16.msra.mxu0 %v3428_v23 }
 0x185   :  { %2638 = vmatprep.subr.bf16.mxu0 %v3432_v24 }
 0x188   :  { %2640 = vmatpush1.bf16.msra.mxu0 %v3436_v30 }
 0x189   :  { %2642 = vmatprep.subr.bf16.mxu0 %v3440_v31 }
 0x18c   :  { %2644 = vmatpush1.bf16.msra.mxu0 %v3444_v37 }
 0x18d   :  { %2646 = vmatprep.subr.bf16.mxu0 %v3448_v38 }
 0x190   :  { %2648 = vmatpush1.bf16.msra.mxu0 %v3452_v42 }
 0x191   :  { %2650 = vmatprep.subr.bf16.mxu0 %v3459_v45 }
 0x194   :  { %2652 = vmatpush1.bf16.msra.mxu0 %v3461_v49 }
 0x195   :  { %2654 = vmatprep.subr.bf16.mxu0 %v3467_v56 }
 0x198   :  { %2656 = vmatpush1.bf16.msra.mxu0 %v3469_v60 }
 0x199   :  { %2658 = vmatprep.subr.bf16.mxu0 %v3475_v7 }
 0x19c   :  { %2660 = vmatpush1.bf16.msra.mxu0 %v3477_v8 }
 0x19d   :  { %2662 = vmatprep.subr.bf16.mxu0 %v3480_v20 }
 0x1a0   :  { %2664 = vmatpush1.bf16.msra.mxu0 %v3484_v25 }
 0x236   :  { %v484_v43 = vpop.f32.mrb[8].mxu0 }
 0x237   :  { %v485_v44 = vadd.f32 %v484_v43, %v204_v53  ;;  %v486_v47 = vpop.f32.mrb[9].mxu0  ;;  %v3628_v53 = vpack.c.bf16 %v944_v36, %v942_v35  ;;  %v966_v35 = vld [vmem:[#allocation10 + $0x180] sm:$0xff]  ;;  %v968_v36 = vld [vmem:[#allocation10 + $0x190] sm:$0xff] }
 0x238   :  { %v487_v48 = vadd.f32 %v3546_v41, %v486_v47  ;;  %v948_v47 = vld [vmem:[#allocation10 + $0xf0] sm:$0xff] }
 0x23a   :  { %3002 = vtanh.f32 %v487_v48  ;;  %v951_v48 = vld [vmem:[#allocation10 + $0x108] sm:$0xff] }
 0x23b   :  { %3004 = vtanh.f32 %v485_v44  ;;  %v946_v44 = vld [vmem:[#allocation10 + $0xe0] sm:$0xff] }
 0x23c   :  { %v3634_v54 = vpack.c.bf16 %v948_v47, %v946_v44  ;;  %v973_v44 = vld [vmem:[#allocation10 + $0x1b8] sm:$0xff] }
 0x244   :  { %v3549_v50 = vpop.eup %3002 }
 0x245   :  { %v3005_v51 = vpop.eup %3004  ;;  %623 = vmatprep.mubr.f32.mxu1 %v3549_v50 }
 0x246   :  { %624 = vmatmul.mubr.f32.vlgmr.msra.gmra.mrb[2].mxu1 %v3005_v51  ;;  %v953_v51 = vld [vmem:[#allocation10 + $0x118] sm:$0xff] }
 0x247   :  { %2668 = vmatpush1.bf16.msra.mxu1 %v3552_v59  ;;  %v3637_v55 = vpack.c.bf16 %v953_v51, %v951_v48  ;;  %v970_v48 = vld [vmem:[#allocation10 + $0x1a0] sm:$0xff]  ;;  %v972_v51 = vld [vmem:[#allocation10 + $0x1b0] sm:$0xff] }
 0x248   :  { %2670 = vmatprep.subr.bf16.mxu1 %v3382_v58  ;;  %v3567_v58 = vpack.c.bf16 %v794_v16, %v792_v14  ;;  %v954_v14 = vld [vmem:[#allocation10 + $0x120] sm:$0xff]  ;;  %v956_v16 = vld [vmem:[#allocation10 + $0x130] sm:$0xff]  ;;  %v3701_v57 = vpack.c.bf16 %v972_v51, %v970_v48  ;;  %v1480_v51 = vld [vmem:[#allocation12 + $0x68] sm:$0xff] }
 0x249   :  { %v1479_v48 = vld [vmem:[#allocation12 + $0x60] sm:$0xff] }
 0x24b   :  { %2672 = vmatpush1.bf16.msra.mxu1 %v3555_v63 }
 0x24c   :  { %2674 = vmatprep.subr.bf16.mxu1 %v3388_v61  ;;  %v3571_v61 = vpack.c.bf16 %v798_v19, %v796_v18  ;;  %v959_v18 = vld [vmem:[#allocation10 + $0x148] sm:$0xff]  ;;  %v961_v19 = vld [vmem:[#allocation10 + $0x158] sm:$0xff] }
 0x24f   :  { %2676 = vmatpush1.bf16.msra.mxu1 %v3559_v4 }
 0x250   :  { %2678 = vmatprep.subr.bf16.mxu1 %v3394_v0 }
 0x253   :  { %2680 = vmatpush1.bf16.msra.mxu1 %v3563_v12 }
 0x254   :  { %2682 = vmatprep.subr.bf16.mxu1 %v3400_v3 }
 0x257   :  { %2684 = vmatpush1.bf16.msra.mxu1 %v3567_v58 }
 0x258   :  { %2686 = vmatprep.subr.bf16.mxu1 %v3406_v6 }
 0x25b   :  { %2688 = vmatpush1.bf16.msra.mxu1 %v3571_v61 }
 0x25c   :  { %2690 = vmatprep.subr.bf16.mxu1 %v3412_v10 }
 0x25f   :  { %2692 = vmatpush1.bf16.msra.mxu1 %v3371_v46  ;;  %v209_v46 = vadd.f32 %v3496_v26, %v3532_v15  ;;  %v949_v15 = vld [vmem:[#allocation10 + $0xf8] sm:$0xff] }
 0x260   :  { %2694 = vmatprep.subr.bf16.mxu1 %v3418_v13  ;;  %v3631_v43 = vpack.c.bf16 %v949_v15, %v947_v39  ;;  %v3693_v39 = vpack.c.bf16 %v968_v36, %v966_v35  ;;  %v971_v15 = vld [vmem:[#allocation10 + $0x1a8] sm:$0xff]  ;;  %v1475_v35 = vld [vmem:[#allocation12 + $0x40] sm:$0xff] }
 0x261   :  { %v3699_v47 = vpack.c.bf16 %v973_v44, %v971_v15  ;;  %v1476_v36 = vld [vmem:[#allocation12 + $0x48] sm:$0xff]  ;;  %v1477_v15 = vld [vmem:[#allocation12 + $0x50] sm:$0xff]  ;;  %v1478_v44 = vld [vmem:[#allocation12 + $0x58] sm:$0xff] }
 0x263   :  { %2696 = vmatpush1.bf16.msra.mxu1 %v3375_v52 }
 0x264   :  { %2698 = vmatprep.subr.bf16.mxu1 %v3424_v17  ;;  %v919_v17 = vld [vmem:[#allocation10 + $0x8] sm:$0xff] }
 0x267   :  { %2700 = vmatpush1.bf16.msra.mxu1 %v3428_v23  ;;  %v921_v23 = vld [vmem:[#allocation10 + $0x18] sm:$0xff] }
 0x268   :  { %2702 = vmatprep.subr.bf16.mxu1 %v3432_v24  ;;  %v923_v24 = vld [vmem:[#allocation10 + $0x28] sm:$0xff] }
 0x26b   :  { %2704 = vmatpush1.bf16.msra.mxu1 %v3436_v30  ;;  %v3601_v30 = vpack.c.bf16 %v921_v23, %v919_v17 }
 0x26c   :  { %2706 = vmatprep.subr.bf16.mxu1 %v3440_v31  ;;  %v925_v31 = vld [vmem:[#allocation10 + $0x38] sm:$0xff] }
 0x26d   :  { %2730 = vmatprep.subr.bf16.mxu0 %v3601_v30 }
 0x26f   :  { %2708 = vmatpush1.bf16.msra.mxu1 %v3444_v37  ;;  %v3603_v37 = vpack.c.bf16 %v925_v31, %v923_v24  ;;  %v962_v24 = vld [vmem:[#allocation10 + $0x160] sm:$0xff]  ;;  %v964_v31 = vld [vmem:[#allocation10 + $0x170] sm:$0xff] }
 0x270   :  { %2710 = vmatprep.subr.bf16.mxu1 %v3448_v38  ;;  %v927_v38 = vld [vmem:[#allocation10 + $0x48] sm:$0xff] }
 0x273   :  { %2712 = vmatpush1.bf16.msra.mxu1 %v3452_v42  ;;  %v929_v42 = vld [vmem:[#allocation10 + $0x58] sm:$0xff] }
 0x274   :  { %2714 = vmatprep.subr.bf16.mxu1 %v3459_v45  ;;  %v3609_v45 = vpack.c.bf16 %v929_v42, %v927_v38  ;;  %v3658_v38 = vpack.c.bf16 %v964_v31, %v962_v24  ;;  %v214_v42 = vadd.f32 %v3530_v9, %v3496_v26  ;;  %v967_v9 = vld [vmem:[#allocation10 + $0x188] sm:$0xff]  ;;  %v219_v31 = vadd.f32 %v3496_v26, %v3536_v28 }
 0x275   :  { %v3691_v32 = vpack.c.bf16 %v969_v29, %v967_v9  ;;  %v224_v28 = vadd.f32 %v3534_v21, %v3496_v26  ;;  %v229_v21 = vadd.f32 %v3496_v26, %v3540_v40  ;;  %v1471_v9 = vld [vmem:[#allocation12 + $0x20] sm:$0xff]  ;;  %v1472_v29 = vld [vmem:[#allocation12 + $0x28] sm:$0xff] }
 0x277   :  { %2716 = vmatpush1.bf16.msra.mxu1 %v3461_v49  ;;  %v931_v49 = vld [vmem:[#allocation10 + $0x68] sm:$0xff] }
 0x278   :  { %2718 = vmatprep.subr.bf16.mxu1 %v3467_v56  ;;  %v933_v56 = vld [vmem:[#allocation10 + $0x78] sm:$0xff] }
 0x27b   :  { %2720 = vmatpush1.bf16.msra.mxu1 %v3469_v60  ;;  %v3613_v60 = vpack.c.bf16 %v933_v56, %v931_v49 }
 0x27c   :  { %2722 = vmatprep.subr.bf16.mxu1 %v3475_v7  ;;  %v935_v7 = vld [vmem:[#allocation10 + $0x88] sm:$0xff] }
 0x27f   :  { %2724 = vmatpush1.bf16.msra.mxu1 %v3477_v8  ;;  %v937_v8 = vld [vmem:[#allocation10 + $0x98] sm:$0xff] }
 0x280   :  { %2726 = vmatprep.subr.bf16.mxu1 %v3480_v20  ;;  %v3617_v20 = vpack.c.bf16 %v937_v8, %v935_v7 }
 0x283   :  { %2728 = vmatpush1.bf16.msra.mxu1 %v3484_v25  ;;  %v941_v25 = vld [vmem:[#allocation10 + $0xb8] sm:$0xff] }
 0x284   :  { %2794 = vmatprep.subr.bf16.mxu1 %v3601_v30  ;;  %v3621_v27 = vpack.c.bf16 %v941_v25, %v939_v22 }
 0x319   :  { %v625_v52 = vpop.f32.mrb[2].mxu1 }
 0x31a   :  { %v626_v0 = vadd.f32 %v625_v52, %v209_v46  ;;  %v627_v3 = vpop.f32.mrb[3].mxu1  ;;  %v3646_v46 = vpack.c.bf16 %v956_v16, %v954_v14  ;;  %v3649_v52 = vpack.c.bf16 %v961_v19, %v959_v18  ;;  %v3706_v14 = vpack.c.bf16 %v977_v1, %v975_v62  ;;  %v976_v16 = vld [vmem:[#allocation10 + $0x1d0] sm:$0xff]  ;;  %v979_v18 = vld [vmem:[#allocation10 + $0x1e8] sm:$0xff]  ;;  %v981_v19 = vld [vmem:[#allocation10 + $0x1f8] sm:$0xff] }
 0x31b   :  { %v628_v6 = vadd.f32 %v3546_v41, %v627_v3  ;;  %v960_v3 = vld [vmem:[#allocation10 + $0x150] sm:$0xff]  ;;  %v1482_v62 = vld [vmem:[#allocation12 + $0x78] sm:$0xff] }
 0x31d   :  { %3006 = vtanh.f32 %v628_v6  ;;  %v963_v6 = vld [vmem:[#allocation10 + $0x168] sm:$0xff] }
 0x31e   :  { %3008 = vtanh.f32 %v626_v0  ;;  %v958_v0 = vld [vmem:[#allocation10 + $0x140] sm:$0xff] }
 0x31f   :  { %v3652_v17 = vpack.c.bf16 %v960_v3, %v958_v0  ;;  %v2787_v0 = vpack.c.bf16 %v976_v16, %v974_v2  ;;  %v3709_v3 = vpack.c.bf16 %v981_v19, %v979_v18 }
 0x327   :  { %v3598_v10 = vpop.eup %3006 }
 0x328   :  { %v3009_v13 = vpop.eup %3008  ;;  %765 = vmatprep.mubr.f32.mxu0 %v3598_v10 }
 0x329   :  { %766 = vmatmul.mubr.f32.vlgmr.msra.gmra.mrb[10].mxu0 %v3009_v13  ;;  %v965_v13 = vld [vmem:[#allocation10 + $0x178] sm:$0xff] }
 0x32a   :  { %2732 = vmatpush1.bf16.msra.mxu0 %v3552_v59  ;;  %v3655_v23 = vpack.c.bf16 %v965_v13, %v963_v6  ;;  %v978_v6 = vld [vmem:[#allocation10 + $0x1e0] sm:$0xff]  ;;  %v980_v13 = vld [vmem:[#allocation10 + $0x1f0] sm:$0xff] }
 0x32b   :  { %2734 = vmatprep.subr.bf16.mxu0 %v3603_v37  ;;  %v2791_v24 = vpack.c.bf16 %v980_v13, %v978_v6 }
 0x32e   :  { %2736 = vmatpush1.bf16.msra.mxu0 %v3555_v63 }
 0x32f   :  { %2738 = vmatprep.subr.bf16.mxu0 %v3609_v45 }
 0x332   :  { %2740 = vmatpush1.bf16.msra.mxu0 %v3559_v4 }
 0x333   :  { %2742 = vmatprep.subr.bf16.mxu0 %v3613_v60 }
 0x336   :  { %2744 = vmatpush1.bf16.msra.mxu0 %v3563_v12 }
 0x337   :  { %2746 = vmatprep.subr.bf16.mxu0 %v3617_v20 }
 0x33a   :  { %2748 = vmatpush1.bf16.msra.mxu0 %v3567_v58 }
 0x33b   :  { %2750 = vmatprep.subr.bf16.mxu0 %v3621_v27 }
 0x33e   :  { %2752 = vmatpush1.bf16.msra.mxu0 %v3571_v61 }
 0x33f   :  { %2754 = vmatprep.subr.bf16.mxu0 %v3625_v33 }
 0x342   :  { %2756 = vmatpush1.bf16.msra.mxu0 %v3628_v53 }
 0x343   :  { %2758 = vmatprep.subr.bf16.mxu0 %v3631_v43 }
 0x346   :  { %2760 = vmatpush1.bf16.msra.mxu0 %v3634_v54 }
 0x347   :  { %2762 = vmatprep.subr.bf16.mxu0 %v3637_v55 }
 0x34a   :  { %2764 = vmatpush1.bf16.msra.mxu0 %v3640_v5 }
 0x34b   :  { %2766 = vmatprep.subr.bf16.mxu0 %v3643_v11 }
 0x34e   :  { %2768 = vmatpush1.bf16.msra.mxu0 %v3646_v46 }
 0x34f   :  { %2770 = vmatprep.subr.bf16.mxu0 %v3649_v52 }
 0x352   :  { %2772 = vmatpush1.bf16.msra.mxu0 %v3652_v17 }
 0x353   :  { %2774 = vmatprep.subr.bf16.mxu0 %v3655_v23 }
 0x356   :  { %2776 = vmatpush1.bf16.msra.mxu0 %v3658_v38 }
 0x357   :  { %2778 = vmatprep.subr.bf16.mxu0 %v3691_v32 }
 0x35a   :  { %2780 = vmatpush1.bf16.msra.mxu0 %v3693_v39 }
 0x35b   :  { %2782 = vmatprep.subr.bf16.mxu0 %v3699_v47 }
 0x35e   :  { %2784 = vmatpush1.bf16.msra.mxu0 %v3701_v57 }
 0x35f   :  { %2786 = vmatprep.subr.bf16.mxu0 %v3706_v14 }
 0x362   :  { %2788 = vmatpush1.bf16.msra.mxu0 %v2787_v0 }
 0x363   :  { %2790 = vmatprep.subr.bf16.mxu0 %v3709_v3 }
 0x366   :  { %2792 = vmatpush1.bf16.msra.mxu0 %v2791_v24 }
 0x367   :  { %2858 = vmatprep.subr.bf16.mxu0 %v3601_v30 }
 0x3fc   :  { %v767_v49 = vpop.f32.mrb[10].mxu0 }
 0x3fd   :  { %v768_v56 = vadd.f32 %v767_v49, %v214_v42  ;;  %v769_v7 = vpop.f32.mrb[11].mxu0 }
 0x3fe   :  { %v770_v8 = vadd.f32 %v3546_v41, %v769_v7 }
 0x400   :  { %3010 = vtanh.f32 %v770_v8 }
 0x401   :  { %3012 = vtanh.f32 %v768_v56 }
 0x40a   :  { %v3665_v22 = vpop.eup %3010 }
 0x40b   :  { %v3013_v25 = vpop.eup %3012  ;;  %907 = vmatprep.mubr.f32.mxu1 %v3665_v22 }
 0x40c   :  { %908 = vmatmul.mubr.f32.vlgmr.msra.gmra.mrb[4].mxu1 %v3013_v25 }
 0x40d   :  { %2796 = vmatpush1.bf16.msra.mxu1 %v3552_v59 }
 0x40e   :  { %2798 = vmatprep.subr.bf16.mxu1 %v3603_v37 }
 0x411   :  { %2800 = vmatpush1.bf16.msra.mxu1 %v3555_v63 }
 0x412   :  { %2802 = vmatprep.subr.bf16.mxu1 %v3609_v45 }
 0x415   :  { %2804 = vmatpush1.bf16.msra.mxu1 %v3559_v4 }
 0x416   :  { %2806 = vmatprep.subr.bf16.mxu1 %v3613_v60 }
 0x419   :  { %2808 = vmatpush1.bf16.msra.mxu1 %v3563_v12 }
 0x41a   :  { %2810 = vmatprep.subr.bf16.mxu1 %v3617_v20 }
 0x41d   :  { %2812 = vmatpush1.bf16.msra.mxu1 %v3567_v58 }
 0x41e   :  { %2814 = vmatprep.subr.bf16.mxu1 %v3621_v27 }
 0x421   :  { %2816 = vmatpush1.bf16.msra.mxu1 %v3571_v61 }
 0x422   :  { %2818 = vmatprep.subr.bf16.mxu1 %v3625_v33 }
 0x425   :  { %2820 = vmatpush1.bf16.msra.mxu1 %v3628_v53 }
 0x426   :  { %2822 = vmatprep.subr.bf16.mxu1 %v3631_v43 }
 0x429   :  { %2824 = vmatpush1.bf16.msra.mxu1 %v3634_v54 }
 0x42a   :  { %2826 = vmatprep.subr.bf16.mxu1 %v3637_v55 }
 0x42d   :  { %2828 = vmatpush1.bf16.msra.mxu1 %v3640_v5 }
 0x42e   :  { %2830 = vmatprep.subr.bf16.mxu1 %v3643_v11 }
 0x431   :  { %2832 = vmatpush1.bf16.msra.mxu1 %v3646_v46 }
 0x432   :  { %2834 = vmatprep.subr.bf16.mxu1 %v3649_v52 }
 0x435   :  { %2836 = vmatpush1.bf16.msra.mxu1 %v3652_v17 }
 0x436   :  { %2838 = vmatprep.subr.bf16.mxu1 %v3655_v23 }
 0x439   :  { %2840 = vmatpush1.bf16.msra.mxu1 %v3658_v38 }
 0x43a   :  { %2842 = vmatprep.subr.bf16.mxu1 %v3691_v32 }
 0x43d   :  { %2844 = vmatpush1.bf16.msra.mxu1 %v3693_v39 }
 0x43e   :  { %2846 = vmatprep.subr.bf16.mxu1 %v3699_v47 }
 0x441   :  { %2848 = vmatpush1.bf16.msra.mxu1 %v3701_v57 }
 0x442   :  { %2850 = vmatprep.subr.bf16.mxu1 %v3706_v14 }
 0x445   :  { %2852 = vmatpush1.bf16.msra.mxu1 %v2787_v0 }
 0x446   :  { %2854 = vmatprep.subr.bf16.mxu1 %v3709_v3 }
 0x449   :  { %2856 = vmatpush1.bf16.msra.mxu1 %v2791_v24 }
 0x44a   :  { %2922 = vmatprep.subr.bf16.mxu1 %v3637_v55 }
 0x4df   :  { %v909_v42 = vpop.f32.mrb[4].mxu1 }
 0x4e0   :  { %v910_v49 = vadd.f32 %v909_v42, %v219_v31  ;;  %v911_v56 = vpop.f32.mrb[5].mxu1 }
 0x4e1   :  { %v912_v7 = vadd.f32 %v3546_v41, %v911_v56 }
 0x4e3   :  { %3014 = vtanh.f32 %v912_v7 }
 0x4e4   :  { %3016 = vtanh.f32 %v910_v49 }
 0x4ed   :  { %v3720_v8 = vpop.eup %3014 }
 0x4ee   :  { %v3017_v25 = vpop.eup %3016  ;;  %1049 = vmatprep.mubr.f32.mxu0 %v3720_v8 }
 0x4ef   :  { %1050 = vmatmul.mubr.f32.vlgmr.msra.gmra.mrb[12].mxu0 %v3017_v25 }
 0x4f0   :  { %2860 = vmatpush1.bf16.msra.mxu0 %v3552_v59 }
 0x4f1   :  { %2862 = vmatprep.subr.bf16.mxu0 %v3603_v37 }
 0x4f4   :  { %2864 = vmatpush1.bf16.msra.mxu0 %v3555_v63 }
 0x4f5   :  { %2866 = vmatprep.subr.bf16.mxu0 %v3609_v45 }
 0x4f8   :  { %2868 = vmatpush1.bf16.msra.mxu0 %v3559_v4 }
 0x4f9   :  { %2870 = vmatprep.subr.bf16.mxu0 %v3613_v60 }
 0x4fc   :  { %2872 = vmatpush1.bf16.msra.mxu0 %v3563_v12 }
 0x4fd   :  { %2874 = vmatprep.subr.bf16.mxu0 %v3617_v20 }
 0x500   :  { %2876 = vmatpush1.bf16.msra.mxu0 %v3567_v58 }
 0x501   :  { %2878 = vmatprep.subr.bf16.mxu0 %v3621_v27 }
 0x504   :  { %2880 = vmatpush1.bf16.msra.mxu0 %v3571_v61 }
 0x505   :  { %2882 = vmatprep.subr.bf16.mxu0 %v3625_v33 }
 0x508   :  { %2884 = vmatpush1.bf16.msra.mxu0 %v3628_v53  ;;  %v1467_v53 = vld [vmem:[#allocation12] sm:$0xff] }
 0x509   :  { %2886 = vmatprep.subr.bf16.mxu0 %v3631_v43 }
 0x50c   :  { %2888 = vmatpush1.bf16.msra.mxu0 %v3634_v54 }
 0x50d   :  { %2890 = vmatprep.subr.bf16.mxu0 %v3637_v55 }
 0x510   :  { %2892 = vmatpush1.bf16.msra.mxu0 %v3640_v5 }
 0x511   :  { %2894 = vmatprep.subr.bf16.mxu0 %v3643_v11 }
 0x514   :  { %2896 = vmatpush1.bf16.msra.mxu0 %v3646_v46  ;;  %v1469_v46 = vld [vmem:[#allocation12 + $0x10] sm:$0xff] }
 0x515   :  { %2898 = vmatprep.subr.bf16.mxu0 %v3649_v52 }
 0x518   :  { %2900 = vmatpush1.bf16.msra.mxu0 %v3652_v17 }
 0x519   :  { %2902 = vmatprep.subr.bf16.mxu0 %v3655_v23 }
 0x51c   :  { %2904 = vmatpush1.bf16.msra.mxu0 %v3658_v38 }
 0x51d   :  { %2906 = vmatprep.subr.bf16.mxu0 %v3691_v32 }
 0x520   :  { %2908 = vmatpush1.bf16.msra.mxu0 %v3693_v39  ;;  %v2969_v39 = vpack.c.bf16 %v1476_v36, %v1475_v35 }
 0x521   :  { %2910 = vmatprep.subr.bf16.mxu0 %v3699_v47 }
 0x524   :  { %2912 = vmatpush1.bf16.msra.mxu0 %v3701_v57  ;;  %v1481_v57 = vld [vmem:[#allocation12 + $0x70] sm:$0xff] }
 0x525   :  { %2914 = vmatprep.subr.bf16.mxu0 %v3706_v14  ;;  %v2981_v1 = vpack.c.bf16 %v1482_v62, %v1481_v57 }
 0x528   :  { %2916 = vmatpush1.bf16.msra.mxu0 %v2787_v0 }
 0x529   :  { %2918 = vmatprep.subr.bf16.mxu0 %v3709_v3 }
 0x52c   :  { %2920 = vmatpush1.bf16.msra.mxu0 %v2791_v24  ;;  %v3790_v24 = vld [vmem:[%s3887_s7] ss:$0 sm:$0xff] }
 0x5c2   :  { %v1051_v59 = vpop.f32.mrb[12].mxu0 }
 0x5c3   :  { %v1052_v63 = vadd.f32 %v1051_v59, %v224_v28  ;;  %v1053_v4 = vpop.f32.mrb[13].mxu0 }
 0x5c4   :  { %v1054_v12 = vadd.f32 %v3546_v41, %v1053_v4 }
 0x5c6   :  { %3018 = vtanh.f32 %v1054_v12 }
 0x5c7   :  { %3020 = vtanh.f32 %v1052_v63 }
 0x5d0   :  { %v3755_v58 = vpop.eup %3018 }
 0x5d1   :  { %v3021_v61 = vpop.eup %3020  ;;  %1191 = vmatprep.mubr.f32.mxu1 %v3755_v58 }
 0x5d2   :  { %1192 = vmatmul.mubr.f32.vlgmr.msra.gmra.mrb[6].mxu1 %v3021_v61 }
 0x5d3   :  { %2924 = vmatpush3.bf16.msra.mxu1 %v3601_v30 }
 0x5d4   :  { %2926 = vmatprep.subr.bf16.mxu1 %v3643_v11 }
 0x5d7   :  { %2928 = vmatpush3.bf16.msra.mxu1 %v3603_v37 }
 0x5d8   :  { %2930 = vmatprep.subr.bf16.mxu1 %v3649_v52  ;;  %v1470_v52 = vld [vmem:[#allocation12 + $0x18] sm:$0xff] }
 0x5d9   :  { %v2957_v38 = vpack.c.bf16 %v1470_v52, %v1469_v46 }
 0x5db   :  { %2932 = vmatpush3.bf16.msra.mxu1 %v3609_v45 }
 0x5dc   :  { %2934 = vmatprep.subr.bf16.mxu1 %v3655_v23 }
 0x5df   :  { %2936 = vmatpush3.bf16.msra.mxu1 %v3613_v60 }
 0x5e0   :  { %2938 = vmatprep.subr.bf16.mxu1 %v3691_v32  ;;  %v1474_v32 = vld [vmem:[#allocation12 + $0x38] sm:$0xff] }
 0x5e3   :  { %2940 = vmatpush3.bf16.msra.mxu1 %v3617_v20 }
 0x5e4   :  { %2942 = vmatprep.subr.bf16.mxu1 %v3699_v47  ;;  %v2973_v47 = vpack.c.bf16 %v1478_v44, %v1477_v15 }
 0x5e7   :  { %2944 = vmatpush3.bf16.msra.mxu1 %v3621_v27 }
 0x5e8   :  { %2946 = vmatprep.subr.bf16.mxu1 %v3706_v14  ;;  %v2160_v14 = vld [vmem:[%s3885_s5] ss:$0 sm:$0xff]  ;;  %s3209_s5 = smov [#allocation14]  }
 0x5e9   :  { %s2140_s7 = sshll.u32 %s3209_s5, 4  ;;  %s2141_s7 = int_to_ptr.vmem [resolvable:$true] %s2140_s7 }
 0x5ea   :  { %s3142_s14 = scalar_lea.vmem %s2141_s7, 256  ;;  %p3147_p13 = scmp.lt.s32.totalorder %s2141_s7, %s2141_s7 }
 0x5eb   :  { %2948 = vmatpush3.bf16.msra.mxu1 %v3625_v33  ;;  %v1468_v33 = vld [vmem:[#allocation12 + $0x8] sm:$0xff]  ;;  %p3143_p12 = scmp.ne.s32.totalorder %s2141_s7, %s3142_s14  ;;  %p3148_p0 = scmp.lt.s32.totalorder %s3142_s14, %s3142_s14 }
 0x5ec   :  { %2950 = vmatprep.subr.bf16.mxu1 %v3709_v3  ;;  %v2953_v54 = vpack.c.bf16 %v1468_v33, %v1467_v53  ;;  %v1600_v3 = vlaneseq }
 0x5ed   :  { %p3149_p1 = por %p3148_p0, %p3147_p13 }
 0x5ee   :  { %v1601_v13 = vshrl.u32 %v1600_v3, 7 }
 0x5ef   :  { %2952 = vmatpush3.bf16.msra.mxu1 %v3631_v43  ;;  %v234_v43 = vadd.f32 %v3538_v34, %v3496_v26  ;;  %v2961_v26 = vpack.c.bf16 %v1472_v29, %v1471_v9  ;;  %v1473_v34 = vld [vmem:[#allocation12 + $0x30] sm:$0xff]  ;;  %p3150_p2 = pnand %p3149_p1, %p3143_p12 }
 0x5f0   :  { %2954 = vmatprep.subr.bf16.mxu1 %v2953_v54 }
 0x6a5   :  { %v1193_v30 = vpop.f32.mrb[6].mxu1 }
 0x6a6   :  { %v1194_v37 = vadd.f32 %v1193_v30, %v229_v21  ;;  %v1195_v45 = vpop.f32.mrb[7].mxu1 }
 0x6a7   :  { %v1196_v60 = vadd.f32 %v3546_v41, %v1195_v45 }
 0x6a9   :  { %3022 = vtanh.f32 %v1196_v60 }
 0x6aa   :  { %3024 = vtanh.f32 %v1194_v37 }
 0x6b3   :  { %v3023_v20 = vpop.eup %3022 }
 0x6b4   :  { %v3025_v27 = vpop.eup %3024  ;;  %1333 = vmatprep.mubr.f32.mxu0 %v3023_v20 }
 0x6b5   :  { %1334 = vmatmul.mubr.f32.vlgmr.msra.gmra.mrb[14].mxu0 %v3025_v27 }
 0x788   :  { %v1335_v55 = vpop.f32.mrb[14].mxu0 }
 0x789   :  { %v1336_v40 = vadd.f32 %v1335_v55, %v234_v43  ;;  %v1337_v5 = vpop.f32.mrb[15].mxu0 }
 0x78a   :  { %v1338_v11 = vadd.f32 %v3546_v41, %v1337_v5  ;;  %v2965_v41 = vpack.c.bf16 %v1474_v32, %v1473_v34 }
 0x78b   :  { %3026 = vtanh.f32 %v1336_v40 }
 0x78c   :  { %3028 = vtanh.f32 %v1338_v11 }
 0x795   :  { %v3027_v17 = vpop.eup %3026 }
 0x796   :  { %v3029_v23 = vpop.eup %3028  ;;  %1456 = vst [vmem:[#allocation14] sm:$0xff] %v3027_v17 }
 0x797   :  { %1447 = vmatprep.mubr.f32.mxu1 %v3029_v23 }
 0x798   :  { %1448 = vmatmul.mubr.f32.vlgmr.msra.gmra.mrb[8].mxu1 %v3027_v17 }
 0x799   :  { %2956 = vmatpush3.bf16.msra.mxu1 %v2953_v54  ;;  %2405 = vmatprep.mubr.f32.mxu1 %v3549_v50  ;;  %v2977_v50 = vpack.c.bf16 %v1480_v51, %v1479_v48 }
 0x79a   :  { %2958 = vmatprep.subr.bf16.mxu1 %v2957_v38 }
 0x79d   :  { %2960 = vmatpush3.bf16.msra.mxu1 %v2957_v38 }
 0x79e   :  { %2962 = vmatprep.subr.bf16.mxu1 %v2961_v26 }
 0x7a1   :  { %2964 = vmatpush3.bf16.msra.mxu1 %v2961_v26 }
 0x7a2   :  { %2966 = vmatprep.subr.bf16.mxu1 %v2965_v41 }
 0x7a5   :  { %2968 = vmatpush3.bf16.msra.mxu1 %v2965_v41 }
 0x7a6   :  { %2970 = vmatprep.subr.bf16.mxu1 %v2969_v39 }
 0x7a9   :  { %2972 = vmatpush3.bf16.msra.mxu1 %v2969_v39 }
 0x7aa   :  { %2974 = vmatprep.subr.bf16.mxu1 %v2973_v47 }
 0x7ad   :  { %2976 = vmatpush3.bf16.msra.mxu1 %v2973_v47 }
 0x7ae   :  { %2978 = vmatprep.subr.bf16.mxu1 %v2977_v50 }
 0x7b1   :  { %2980 = vmatpush3.bf16.msra.mxu1 %v2977_v50 }
 0x7b2   :  { %2982 = vmatprep.subr.bf16.mxu1 %v2981_v1 }
 0x7b5   :  { %2984 = vmatpush3.bf16.msra.mxu1 %v2981_v1 }
 0x7b8   :  { %2406 = vmatmul.mubr.f32.vlgmr.msra.gmra.mrb[10].mxu1 %v3598_v10  ;;  %v3208_v10 = vmov 1966171168  }
 0x7b9   :  { %2408 = vmatprep.mubr.f32.mxu1 %v3665_v22  ;;  %v1598_v22 = vunpack.c.l.s4 %v3208_v10 }
 0x7bb   :  { %v1599_v6 = vunpack.c.0.s8 %v1598_v22 }
 0x7bc   :  { %2409 = vmatmul.mubr.f32.gmra.mrb[12].mxu1 %v3720_v8 }
 0x7bd   :  { %2411 = vmatprep.mubr.f32.mxu1 %v3755_v58  ;;  %v3792_v31 = vsub.s32 %v1599_v6, %v1601_v13 }
 0x7c0   :  { %2412 = vmatmul.mubr.f32.gmra.mrb[14].mxu1 %v3023_v20 }
 0x7c1   :  { %2414 = vmatprep.mubr.f32.mxu1 %v3029_v23 }
 0x86b   :  { %v2267_v2 = vpop.f32.mrb[8].mxu1 }
 0x86c   :  { %v2268_v16 = vpop.f32.mrb[9].mxu1 }
 0x86d   :  { %v2269_v18 = vadd.f32 %v2268_v16, %v2267_v2 }
 0x86f   :  { %v1450_v19 = vadd.f32 %v2269_v18, %v2160_v14 }
 0x871   :  { %3030 = vtanh.f32 %v1450_v19 }
 0x87b   :  { %v3031_v0 = vpop.eup %3030 }
 0x87c   :  { %1458 = vst [vmem:[#allocation14 + $0x8] sm:$0xff] %v3031_v0  ;;  %2415 = vmatmul.mubr.f32.gmra.mrb[16].mxu1 %v3031_v0 }
 0x88b   :  { %v2407_v42 = vpop.f32.mrb[10].mxu1 }
 0x88c   :  { %v1562_v49 = vadd.f32 %v2407_v42, %v3790_v24  ;;  %v1556_v56 = vpop.f32.mrb[11].mxu1 }
 0x88d   :  { %v1557_v7 = vadd.f32 %v3790_v24, %v1556_v56 }
 0x88e   :  { %v1662_v8 = vcombine.high %v1562_v49, %v1562_v49  ;;  %v1669_v25 = vrot.slane %v1562_v49, %v3792_v31 }
 0x88f   :  { %v1596_v28 = vcombine.high %v1557_v7, %v1557_v7  ;;  %v1603_v59 = vrot.slane %v1557_v7, %v3792_v31  ;;  %v2410_v63 = vpop.f32.mrb[12].mxu1 }
 0x890   :  { %v1676_v4 = vrot.slane %v1662_v8, %v3792_v31  ;;  %v1677_v12 = vcombine.high %v1669_v25, %v1669_v25  ;;  %v1685_v58 = vrot.slane %v1669_v25, %v3792_v31  ;;  %2166 = vst.sshfl [vmem:[#allocation13 + $0x1] sm:$0x1 pattern:$0x73625140] %v1669_v25  ;;  %v1572_v61 = vadd.f32 %v2410_v63, %v3790_v24  ;;  %v1566_v21 = vpop.f32.mrb[13].mxu1 }
 0x891   :  { %v1610_v30 = vrot.slane %v1596_v28, %v3792_v31  ;;  %v1611_v37 = vcombine.high %v1603_v59, %v1603_v59  ;;  %v1619_v45 = vrot.slane %v1603_v59, %v3792_v31  ;;  %2162 = vst.sshfl [vmem:[#allocation13] sm:$0x1 pattern:$0x73625140] %v1603_v59  ;;  %v1567_v60 = vadd.f32 %v3790_v24, %v1566_v21 }
 0x892   :  { %v1678_v20 = vcombine.high %v1676_v4, %v1676_v4  ;;  %v1692_v27 = vrot.slane %v1676_v4, %v3792_v31  ;;  %v1699_v53 = vrot.slane %v1677_v12, %v3792_v31  ;;  %v1707_v33 = vcombine.high %v1685_v58, %v1685_v58  ;;  %2167 = vst.sshfl [vmem:[#allocation13 + $0x9] sm:$0x1 pattern:$0x73625140] %v1677_v12 }
 0x893   :  { %2168 = vst.sshfl [vmem:[#allocation13 + $0x21] sm:$0x1 pattern:$0x73625140] %v1676_v4  ;;  %v1612_v54 = vcombine.high %v1610_v30, %v1610_v30  ;;  %v1626_v43 = vrot.slane %v1610_v30, %v3792_v31  ;;  %v1633_v55 = vrot.slane %v1611_v37, %v3792_v31  ;;  %v1641_v40 = vcombine.high %v1619_v45, %v1619_v45  ;;  %v2413_v5 = vpop.f32.mrb[14].mxu1 }
 0x894   :  { %2163 = vst.sshfl [vmem:[#allocation13 + $0x8] sm:$0x1 pattern:$0x73625140] %v1611_v37  ;;  %v1706_v11 = vrot.slane %v1678_v20, %v3792_v31  ;;  %v1708_v46 = vcombine.high %v1692_v27, %v1692_v27  ;;  %v1709_v52 = vcombine.high %v1699_v53, %v1699_v53  ;;  %1721 = vst [vmem:[#allocation13 + $0x11] sm:$0x1] %v1707_v33 }
 0x895   :  { %2164 = vst.sshfl [vmem:[#allocation13 + $0x20] sm:$0x1 pattern:$0x73625140] %v1610_v30  ;;  %v1794_v17 = vcombine.high %v1572_v61, %v1572_v61  ;;  %v1576_v23 = vpop.f32.mrb[15].mxu1  ;;  %v1640_v38 = vrot.slane %v1612_v54, %v3792_v31  ;;  %v1642_v9 = vcombine.high %v1626_v43, %v1626_v43  ;;  %v1643_v29 = vcombine.high %v1633_v55, %v1633_v55 }
 0x896   :  { %2169 = vst.sshfl [vmem:[#allocation13 + $0x29] sm:$0x1 pattern:$0x73625140] %v1678_v20  ;;  %1655 = vst [vmem:[#allocation13 + $0x10] sm:$0x1] %v1641_v40  ;;  %v1801_v26 = vrot.slane %v1572_v61, %v3792_v31  ;;  %v1710_v34 = vcombine.high %v1706_v11, %v1706_v11  ;;  %v1728_v41 = vcombine.high %v1567_v60, %v1567_v60 }
 0x897   :  { %2165 = vst.sshfl [vmem:[#allocation13 + $0x28] sm:$0x1 pattern:$0x73625140] %v1612_v54  ;;  %1722 = vst [vmem:[#allocation13 + $0x19] sm:$0x1] %v1709_v52  ;;  %v1808_v32 = vrot.slane %v1794_v17, %v3792_v31  ;;  %v1735_v35 = vrot.slane %v1567_v60, %v3792_v31  ;;  %v1644_v36 = vcombine.high %v1640_v38, %v1640_v38 }
 0x898   :  { %1725 = vst [vmem:[#allocation13 + $0x31] sm:$0x1] %v1708_v46  ;;  %1656 = vst [vmem:[#allocation13 + $0x18] sm:$0x1] %v1643_v29  ;;  %v1809_v39 = vcombine.high %v1801_v26, %v1801_v26  ;;  %v1817_v15 = vrot.slane %v1801_v26, %v3792_v31  ;;  %v1582_v44 = vadd.f32 %v2413_v5, %v3790_v24 }
 0x899   :  { %1659 = vst [vmem:[#allocation13 + $0x30] sm:$0x1] %v1642_v9  ;;  %2174 = vst.sshfl [vmem:[#allocation13 + $0x3] sm:$0x1 pattern:$0x73625140] %v1801_v26  ;;  %v1810_v47 = vcombine.high %v1808_v32, %v1808_v32  ;;  %v1824_v48 = vrot.slane %v1808_v32, %v3792_v31  ;;  %v1742_v51 = vrot.slane %v1728_v41, %v3792_v31 }
 0x89a   :  { %1726 = vst [vmem:[#allocation13 + $0x39] sm:$0x1] %v1710_v34  ;;  %2176 = vst.sshfl [vmem:[#allocation13 + $0x23] sm:$0x1 pattern:$0x73625140] %v1808_v32  ;;  %v1743_v50 = vcombine.high %v1735_v35, %v1735_v35  ;;  %v1831_v57 = vrot.slane %v1809_v39, %v3792_v31  ;;  %v1839_v62 = vcombine.high %v1817_v15, %v1817_v15 }
 0x89b   :  { %2170 = vst.sshfl [vmem:[#allocation13 + $0x2] sm:$0x1 pattern:$0x73625140] %v1735_v35  ;;  %1660 = vst [vmem:[#allocation13 + $0x38] sm:$0x1] %v1644_v36  ;;  %v1751_v1 = vrot.slane %v1735_v35, %v3792_v31  ;;  %v1926_v2 = vcombine.high %v1582_v44, %v1582_v44  ;;  %v1838_v14 = vrot.slane %v1810_v47, %v3792_v31 }
 0x89c   :  { %2175 = vst.sshfl [vmem:[#allocation13 + $0xb] sm:$0x1 pattern:$0x73625140] %v1809_v39  ;;  %v1840_v16 = vcombine.high %v1824_v48, %v1824_v48  ;;  %v1744_v18 = vcombine.high %v1742_v51, %v1742_v51  ;;  %v1758_v19 = vrot.slane %v1742_v51, %v3792_v31  ;;  %v1841_v0 = vcombine.high %v1831_v57, %v1831_v57 }
 0x89d   :  { %2177 = vst.sshfl [vmem:[#allocation13 + $0x2b] sm:$0x1 pattern:$0x73625140] %v1810_v47  ;;  %1853 = vst [vmem:[#allocation13 + $0x13] sm:$0x1] %v1839_v62  ;;  %v1765_v10 = vrot.slane %v1743_v50, %v3792_v31  ;;  %v1773_v22 = vcombine.high %v1751_v1, %v1751_v1  ;;  %v1933_v3 = vrot.slane %v1582_v44, %v3792_v31 }
 0x89e   :  { %2171 = vst.sshfl [vmem:[#allocation13 + $0xa] sm:$0x1 pattern:$0x73625140] %v1743_v50  ;;  %v1842_v6 = vcombine.high %v1838_v14, %v1838_v14  ;;  %1857 = vst [vmem:[#allocation13 + $0x33] sm:$0x1] %v1840_v16  ;;  %v1772_v13 = vrot.slane %v1744_v18, %v3792_v31  ;;  %v1774_v42 = vcombine.high %v1758_v19, %v1758_v19 }
 0x89f   :  { %2172 = vst.sshfl [vmem:[#allocation13 + $0x22] sm:$0x1 pattern:$0x73625140] %v1742_v51  ;;  %v1940_v49 = vrot.slane %v1926_v2, %v3792_v31  ;;  %1854 = vst [vmem:[#allocation13 + $0x1b] sm:$0x1] %v1841_v0  ;;  %v1775_v56 = vcombine.high %v1765_v10, %v1765_v10  ;;  %v1941_v7 = vcombine.high %v1933_v3, %v1933_v3 }
 0x8a0   :  { %2173 = vst.sshfl [vmem:[#allocation13 + $0x2a] sm:$0x1 pattern:$0x73625140] %v1744_v18  ;;  %1787 = vst [vmem:[#allocation13 + $0x12] sm:$0x1] %v1773_v22  ;;  %v1949_v8 = vrot.slane %v1933_v3, %v3792_v31  ;;  %v1577_v25 = vadd.f32 %v3790_v24, %v1576_v23  ;;  %v1776_v28 = vcombine.high %v1772_v13, %v1772_v13 }
 0x8a1   :  { %2182 = vst.sshfl [vmem:[#allocation13 + $0x5] sm:$0x1 pattern:$0x73625140] %v1933_v3  ;;  %1858 = vst [vmem:[#allocation13 + $0x3b] sm:$0x1] %v1842_v6  ;;  %v1942_v59 = vcombine.high %v1940_v49, %v1940_v49  ;;  %v1956_v63 = vrot.slane %v1940_v49, %v3792_v31  ;;  %v1963_v4 = vrot.slane %v1941_v7, %v3792_v31 }
 0x8a2   :  { %1791 = vst [vmem:[#allocation13 + $0x32] sm:$0x1] %v1774_v42  ;;  %2184 = vst.sshfl [vmem:[#allocation13 + $0x25] sm:$0x1 pattern:$0x73625140] %v1940_v49  ;;  %v1971_v12 = vcombine.high %v1949_v8, %v1949_v8  ;;  %v1860_v58 = vcombine.high %v1577_v25, %v1577_v25  ;;  %v1867_v61 = vrot.slane %v1577_v25, %v3792_v31 }
 0x8a3   :  { %1788 = vst [vmem:[#allocation13 + $0x1a] sm:$0x1] %v1775_v56  ;;  %2183 = vst.sshfl [vmem:[#allocation13 + $0xd] sm:$0x1 pattern:$0x73625140] %v1941_v7  ;;  %v1970_v21 = vrot.slane %v1942_v59, %v3792_v31  ;;  %v1972_v30 = vcombine.high %v1956_v63, %v1956_v63  ;;  %v1973_v37 = vcombine.high %v1963_v4, %v1963_v4 }
 0x8a4   :  { %1792 = vst [vmem:[#allocation13 + $0x3a] sm:$0x1] %v1776_v28  ;;  %2185 = vst.sshfl [vmem:[#allocation13 + $0x2d] sm:$0x1 pattern:$0x73625140] %v1942_v59  ;;  %v1874_v45 = vrot.slane %v1860_v58, %v3792_v31  ;;  %v1875_v60 = vcombine.high %v1867_v61, %v1867_v61  ;;  %v1883_v20 = vrot.slane %v1867_v61, %v3792_v31 }
 0x8a5   :  { %1985 = vst [vmem:[#allocation13 + $0x15] sm:$0x1] %v1971_v12  ;;  %2178 = vst.sshfl [vmem:[#allocation13 + $0x4] sm:$0x1 pattern:$0x73625140] %v1867_v61  ;;  %v1974_v27 = vcombine.high %v1970_v21, %v1970_v21 }
 0x8a6   :  { %1989 = vst [vmem:[#allocation13 + $0x35] sm:$0x1] %v1972_v30  ;;  %1986 = vst [vmem:[#allocation13 + $0x1d] sm:$0x1] %v1973_v37  ;;  %v1876_v53 = vcombine.high %v1874_v45, %v1874_v45  ;;  %v1890_v33 = vrot.slane %v1874_v45, %v3792_v31  ;;  %v1897_v54 = vrot.slane %v1875_v60, %v3792_v31 }
 0x8a7   :  { %v1905_v43 = vcombine.high %v1883_v20, %v1883_v20  ;;  %2179 = vst.sshfl [vmem:[#allocation13 + $0xc] sm:$0x1 pattern:$0x73625140] %v1875_v60  ;;  %1990 = vst [vmem:[#allocation13 + $0x3d] sm:$0x1] %v1974_v27 }
 0x8a8   :  { %2180 = vst.sshfl [vmem:[#allocation13 + $0x24] sm:$0x1 pattern:$0x73625140] %v1874_v45  ;;  %v1904_v55 = vrot.slane %v1876_v53, %v3792_v31  ;;  %v1906_v40 = vcombine.high %v1890_v33, %v1890_v33  ;;  %v1907_v5 = vcombine.high %v1897_v54, %v1897_v54 }
 0x8a9   :  { %1919 = vst [vmem:[#allocation13 + $0x14] sm:$0x1] %v1905_v43  ;;  %2181 = vst.sshfl [vmem:[#allocation13 + $0x2c] sm:$0x1 pattern:$0x73625140] %v1876_v53 }
 0x8aa   :  { %v1908_v11 = vcombine.high %v1904_v55, %v1904_v55  ;;  %1920 = vst [vmem:[#allocation13 + $0x1c] sm:$0x1] %v1907_v5  ;;  %1923 = vst [vmem:[#allocation13 + $0x34] sm:$0x1] %v1906_v40 }
 0x8ac   :  { %1924 = vst [vmem:[#allocation13 + $0x3c] sm:$0x1] %v1908_v11 }
 0x8ad   :  { %3153 = shalt.err (!%p3150_p2)
}
 0x8ae   :  { %s3154_s0 = scalar_lea.hbm %s3889_s9, 256 }
 0x8af   :  { %p3155_p3 = scmp.ne.s32.totalorder %s3889_s9, %s3154_s0  ;;  %p3158_p4 = scmp.lt.u32.totalorder %s3154_s0, %s3889_s9 }
 0x8b1   :  { %p3160_p5 = pnand %p3158_p4, %p3155_p3 }
 0x8b3   :  { %3163 = shalt.err (!%p3160_p5)
}
 0x8b4   :  { %2146 = dma.vmem_to_hbm [thread:$0]  %s2141_s7, 256, %s3889_s9, [#allocation15], %s3198_s21, %s3198_s21, %s3199_s22  }
 0x8b5   :  { %s3210_s9 = smov [#allocation13]  }
 0x8b6   :  { %s2128_s26 = sshll.u32 %s3210_s9, 4  ;;  %s2129_s26 = int_to_ptr.vmem [resolvable:$true] %s2128_s26 }
 0x8b7   :  { %s3164_s27 = scalar_lea.vmem %s2129_s26, 1024  ;;  %p3169_p7 = scmp.lt.s32.totalorder %s2129_s26, %s2129_s26 }
 0x8b8   :  { %p3165_p6 = scmp.ne.s32.totalorder %s2129_s26, %s3164_s27  ;;  %p3170_p8 = scmp.lt.s32.totalorder %s3164_s27, %s3164_s27 }
 0x8ba   :  { %p3171_p9 = por %p3170_p8, %p3169_p7 }
 0x8bc   :  { %p3172_p10 = pnand %p3171_p9, %p3165_p6 }
 0x94f   :  { %v2416_v46 = vpop.f32.mrb[16].mxu1 }
 0x950   :  { %v1592_v52 = vadd.f32 %v2416_v46, %v3790_v24  ;;  %v1586_v17 = vpop.f32.mrb[17].mxu1 }
 0x951   :  { %v1587_v23 = vadd.f32 %v3790_v24, %v1586_v17 }
 0x952   :  { %v2058_v38 = vcombine.high %v1592_v52, %v1592_v52  ;;  %v2065_v9 = vrot.slane %v1592_v52, %v3792_v31 }
 0x953   :  { %v1992_v29 = vcombine.high %v1587_v23, %v1587_v23  ;;  %v1999_v26 = vrot.slane %v1587_v23, %v3792_v31 }
 0x954   :  { %v2072_v34 = vrot.slane %v2058_v38, %v3792_v31  ;;  %v2073_v32 = vcombine.high %v2065_v9, %v2065_v9  ;;  %v2081_v41 = vrot.slane %v2065_v9, %v3792_v31  ;;  %2190 = vst.sshfl [vmem:[#allocation13 + $0x7] sm:$0x1 pattern:$0x73625140] %v2065_v9 }
 0x955   :  { %v2006_v35 = vrot.slane %v1992_v29, %v3792_v31  ;;  %v2007_v36 = vcombine.high %v1999_v26, %v1999_v26  ;;  %v2015_v39 = vrot.slane %v1999_v26, %v3792_v31  ;;  %2186 = vst.sshfl [vmem:[#allocation13 + $0x6] sm:$0x1 pattern:$0x73625140] %v1999_v26 }
 0x956   :  { %v2074_v15 = vcombine.high %v2072_v34, %v2072_v34  ;;  %v2088_v24 = vrot.slane %v2072_v34, %v3792_v31  ;;  %v2095_v44 = vrot.slane %v2073_v32, %v3792_v31  ;;  %v2103_v47 = vcombine.high %v2081_v41, %v2081_v41  ;;  %2191 = vst.sshfl [vmem:[#allocation13 + $0xf] sm:$0x1 pattern:$0x73625140] %v2073_v32 }
 0x957   :  { %2192 = vst.sshfl [vmem:[#allocation13 + $0x27] sm:$0x1 pattern:$0x73625140] %v2072_v34  ;;  %v2008_v48 = vcombine.high %v2006_v35, %v2006_v35  ;;  %v2022_v51 = vrot.slane %v2006_v35, %v3792_v31  ;;  %v2029_v50 = vrot.slane %v2007_v36, %v3792_v31  ;;  %v2037_v57 = vcombine.high %v2015_v39, %v2015_v39 }
 0x958   :  { %2187 = vst.sshfl [vmem:[#allocation13 + $0xe] sm:$0x1 pattern:$0x73625140] %v2007_v36  ;;  %v2102_v62 = vrot.slane %v2074_v15, %v3792_v31  ;;  %v2104_v1 = vcombine.high %v2088_v24, %v2088_v24  ;;  %v2105_v2 = vcombine.high %v2095_v44, %v2095_v44  ;;  %2117 = vst [vmem:[#allocation13 + $0x17] sm:$0x1] %v2103_v47 }
 0x959   :  { %2188 = vst.sshfl [vmem:[#allocation13 + $0x26] sm:$0x1 pattern:$0x73625140] %v2006_v35  ;;  %v2036_v14 = vrot.slane %v2008_v48, %v3792_v31  ;;  %v2038_v16 = vcombine.high %v2022_v51, %v2022_v51  ;;  %v2039_v18 = vcombine.high %v2029_v50, %v2029_v50  ;;  %2051 = vst [vmem:[#allocation13 + $0x16] sm:$0x1] %v2037_v57 }
 0x95a   :  { %2193 = vst.sshfl [vmem:[#allocation13 + $0x2f] sm:$0x1 pattern:$0x73625140] %v2074_v15  ;;  %v2106_v19 = vcombine.high %v2102_v62, %v2102_v62  ;;  %2118 = vst [vmem:[#allocation13 + $0x1f] sm:$0x1] %v2105_v2 }
 0x95b   :  { %2189 = vst.sshfl [vmem:[#allocation13 + $0x2e] sm:$0x1 pattern:$0x73625140] %v2008_v48  ;;  %2121 = vst [vmem:[#allocation13 + $0x37] sm:$0x1] %v2104_v1  ;;  %v2040_v0 = vcombine.high %v2036_v14, %v2036_v14 }
 0x95c   :  { %2052 = vst [vmem:[#allocation13 + $0x1e] sm:$0x1] %v2039_v18  ;;  %2055 = vst [vmem:[#allocation13 + $0x36] sm:$0x1] %v2038_v16 }
 0x95d   :  { %2122 = vst [vmem:[#allocation13 + $0x3f] sm:$0x1] %v2106_v19  ;;  %2056 = vst [vmem:[#allocation13 + $0x3e] sm:$0x1] %v2040_v0 }
 0x95e   :  { %3175 = shalt.err (!%p3172_p10)
}
 0x95f   :  { %s3176_s12 = scalar_lea.hbm %s3888_s8, 1024 }
 0x960   :  { %p3177_p11 = scmp.ne.s32.totalorder %s3888_s8, %s3176_s12  ;;  %p3180_p12 = scmp.lt.u32.totalorder %s3176_s12, %s3888_s8 }
 0x962   :  { %p3182_p13 = pnand %p3180_p12, %p3177_p11 }
 0x964   :  { %3185 = shalt.err (!%p3182_p13)
}
 0x965   :  { %2134 = dma.vmem_to_hbm [thread:$0]  %s2129_s26, 1024, %s3888_s8, [#allocation6], %s3198_s21, %s3198_s21, %s3199_s22  }
 0x966   :  { %3192 = dma.done.wait [#allocation6], 1024  }
 0x967   :  { %3193 = vsyncadd [#allocation6], 4294966272 }
 0x968   :  { %3194 = dma.done.wait [#allocation15], 256  }
 0x969   :  { %3195 = vsyncadd [#allocation15], 4294967040 }
 0x96a   :  { %2153 = vsyncpa [#allocation5], 1 }
 0x96b   :  { %2154 = vsyncpa [#allocation8], 1 }
 0x96c   :  { %2155 = vsyncpa [#allocation11], 1 }
 0x96d   :  { %2156 = vsyncpa [#allocation6], 1 }
 0x96e   :  { %2157 = vsyncpa [#allocation15], 1 }

</bundles_post_ra>
